<compile_context>
chip_gen: v6e
topology: v6e:2x2x1
jax: 0.10.0
libtpu: 0.0.40
codegen_flags: <defaults>
</compile_context>

<pallas_src>
import functools

import jax
import jax.numpy as jnp
import numpy as np
from jax.experimental import pallas as pl
from jax.experimental.pallas import tpu as pltpu


LN_EPS = 1e-12
_NC = 128   # matmul rhs width (canonical MXU lane width)
_NO = 8     # stored output columns (col 0 = start prob, col 1 = end prob)


def _round_up(x, m):
    return ((x + m - 1) // m) * m


# ---------------------------------------------------------------------------
# Pallas kernel: fused LN-statistics + folded start/end heads + sigmoid
# ---------------------------------------------------------------------------
def uie_head_kernel(x_ref, wc_ref, bias_ref, out_ref, *, hidden):
    """One row-tile of flattened tokens.

    x_ref:    (TM, H)   bf16 pre-layernorm activations
    wc_ref:   (H, 128)  bf16: col0 = folded+centered w_start, col1 = w_end,
                        col2 = ones (for sum(x)), rest zero
    bias_ref: (1, 8)    f32 folded biases (b + w.beta) in cols 0/1
    out_ref:  (TM, 8)   f32: col0 = start_prob, col1 = end_prob
    """
    x = x_ref[...]                                            # (TM, H) bf16

    # One MXU dot (bf16 operands, f32 accumulate), transpose-free canonical
    # form: gives both head dots and sum(x) at once.
    y = jnp.dot(x, wc_ref[...],
                preferred_element_type=jnp.float32)           # (TM, 128)
    ys = y[:, :_NO]                                           # (TM, 8)

    inv_h = 1.0 / hidden
    mean = ys[:, 2:3] * inv_h                                 # (TM, 1)

    # Variance via E[x^2] - mean^2 (f32 square + lane reduce); clamp >= 0.
    x32 = x.astype(jnp.float32)
    ex2 = jnp.sum(x32 * x32, axis=-1, keepdims=True) * inv_h  # (TM, 1)
    var = jnp.maximum(ex2 - mean * mean, 0.0)
    inv_std = jax.lax.rsqrt(var + LN_EPS)                     # (TM, 1)

    # Folded-head logits: (w_centered . x) * rsqrt(var) + b'   (cols 0/1).
    logits = ys * inv_std + bias_ref[...]                     # (TM, 8)
    out_ref[...] = jax.nn.sigmoid(logits).astype(out_ref.dtype)


def uie_ln_head(emb, ln_gamma, ln_beta, w_heads, b_heads, *, tm_target=1024):
    """emb: (B, S, H) bf16 pre-layernorm activations. Returns (start, end) f32 (B, S)."""
    B, S, H = emb.shape
    N = B * S
    x = emb.reshape(N, H)                                     # no padding, no copy

    # ---- Fold LN gamma/beta into the head weights (tiny, outside kernel) ----
    # logit = w.((x-mean)*gamma*rsqrt(var) + beta) + b
    #       = ((w*gamma - mean_h(w*gamma)) . x) * rsqrt(var) + (b + w.beta)
    gamma = ln_gamma.astype(jnp.float32)
    beta = ln_beta.astype(jnp.float32)
    w = w_heads.astype(jnp.float32)                           # (2, H)
    wp = w * gamma[None, :]
    wc = wp - jnp.mean(wp, axis=-1, keepdims=True)            # centered (2, H)
    bp = b_heads.astype(jnp.float32) + w @ beta               # (2,)

    wc_mat = jnp.zeros((H, _NC), jnp.float32)
    wc_mat = wc_mat.at[:, 0].set(wc[0]).at[:, 1].set(wc[1]).at[:, 2].set(1.0)
    wc_mat = wc_mat.astype(jnp.bfloat16)
    bias_row = jnp.zeros((1, _NO), jnp.float32)
    bias_row = bias_row.at[0, 0].set(bp[0]).at[0, 1].set(bp[1])

    # ---- Tiling: large lane/sublane-aligned row blocks, ragged last block ----
    tm = min(tm_target, _round_up(N, 128))
    grid = (pl.cdiv(N, tm),)
    n_out = grid[0] * tm                                      # output stays padded (cheap)

    cost = pl.CostEstimate(
        flops=int(2 * N * H * _NC + 3 * N * H),               # head/stat dot + var path
        transcendentals=int(9 * N),                           # rsqrt + sigmoids
        bytes_accessed=int(N * H * x.dtype.itemsize           # one activation read
                           + H * _NC * 2                      # folded weights
                           + n_out * _NO * 4),                # prob writeback
    )

    out = pl.pallas_call(
        functools.partial(uie_head_kernel, hidden=float(H)),
        out_shape=jax.ShapeDtypeStruct((n_out, _NO), jnp.float32),
        grid_spec=pltpu.PrefetchScalarGridSpec(
            num_scalar_prefetch=0,
            grid=grid,
            in_specs=[
                pl.BlockSpec((tm, H), lambda i: (i, 0)),      # activations (bf16, ragged tail ok)
                pl.BlockSpec((H, _NC), lambda i: (0, 0)),     # folded head/stat weights
                pl.BlockSpec((1, _NO), lambda i: (0, 0)),     # folded biases
            ],
            out_specs=pl.BlockSpec((tm, _NO), lambda i: (i, 0)),
        ),
        compiler_params=pltpu.CompilerParams(
            dimension_semantics=("parallel",)),               # shards across v7x TCs
        cost_estimate=cost,
    )(x, wc_mat, bias_row)

    probs = out[:N]                                           # drop garbage tail rows
    start_prob = probs[:, 0].reshape(B, S)
    end_prob = probs[:, 1].reshape(B, S)
    return start_prob, end_prob


# ---------------------------------------------------------------------------
# Synthetic deterministic encoder (plain JAX glue): embedding sum only.
# The final layernorm of the encoder is fused into the Pallas kernel above.
# ---------------------------------------------------------------------------
def synthetic_encoder_embeddings(params, input_ids, token_type_ids, pos_ids):
    emb = (params["word_emb"][input_ids]
           + params["type_emb"][token_type_ids]
           + params["pos_emb"][pos_ids])                      # (B, S, H) f32
    # bf16 activations: halves HBM traffic for the memory-bound head kernel.
    return emb.astype(jnp.bfloat16)


# ---------------------------------------------------------------------------
# Full UIE forward
# ---------------------------------------------------------------------------
@jax.jit
def uie_forward(params, input_ids, token_type_ids, pos_ids):
    emb = synthetic_encoder_embeddings(params, input_ids, token_type_ids, pos_ids)
    start_prob, end_prob = uie_ln_head(
        emb, params["ln_gamma"], params["ln_beta"],
        params["w_heads"], params["b_heads"])
    return start_prob, end_prob


def init_params(key, vocab_size, type_vocab_size, max_pos, hidden_size):
    keys = jax.random.split(key, 6)
    scale = 0.02
    return {
        "word_emb": scale * jax.random.normal(keys[0], (vocab_size, hidden_size), jnp.float32),
        "type_emb": scale * jax.random.normal(keys[1], (type_vocab_size, hidden_size), jnp.float32),
        "pos_emb": scale * jax.random.normal(keys[2], (max_pos, hidden_size), jnp.float32),
        "ln_gamma": jnp.ones((hidden_size,), jnp.float32),
        "ln_beta": jnp.zeros((hidden_size,), jnp.float32),
        # linear_start and linear_end: nn.Linear(768, 1) each -> stacked (2, H), (2,)
        "w_heads": scale * jax.random.normal(keys[3], (2, hidden_size), jnp.float32),
        "b_heads": scale * jax.random.normal(keys[4], (2,), jnp.float32),
    }


def _reference_forward(params, input_ids, token_type_ids, pos_ids):
    """Pure-JAX reference on the same bf16 activations (for correctness check)."""
    x = synthetic_encoder_embeddings(params, input_ids, token_type_ids,
                                     pos_ids).astype(jnp.float32)
    mean = jnp.mean(x, axis=-1, keepdims=True)
    var = jnp.mean(jnp.square(x - mean), axis=-1, keepdims=True)
    h = (x - mean) * jax.lax.rsqrt(var + LN_EPS)
    h = h * params["ln_gamma"] + params["ln_beta"]
    logits = jnp.einsum("bsh,oh->bso", h, params["w_heads"]) + params["b_heads"]
    probs = jax.nn.sigmoid(logits)
    return probs[..., 0], probs[..., 1]


if __name__ == "__main__":
    B, S, H = 2, 16, 768          # hidden_size fixed to 768 by the module
    VOCAB, TYPES, MAX_POS = 100, 2, 64

    key = jax.random.PRNGKey(0)
    pkey, ikey, tkey = jax.random.split(key, 3)

    params = init_params(pkey, VOCAB, TYPES, MAX_POS, H)
    input_ids = jax.random.randint(ikey, (B, S), 0, VOCAB, dtype=jnp.int32)
    token_type_ids = jax.random.randint(tkey, (B, S), 0, TYPES, dtype=jnp.int32)
    pos_ids = jnp.broadcast_to(jnp.arange(S, dtype=jnp.int32), (B, S))

    start_prob, end_prob = uie_forward(params, input_ids, token_type_ids, pos_ids)
    jax.block_until_ready((start_prob, end_prob))

    assert start_prob.shape == (B, S) and end_prob.shape == (B, S)
    assert bool(jnp.all((start_prob >= 0) & (start_prob <= 1)))
    assert bool(jnp.all((end_prob >= 0) & (end_prob <= 1)))

    ref_start, ref_end = _reference_forward(params, input_ids, token_type_ids, pos_ids)
    np.testing.assert_allclose(np.asarray(start_prob), np.asarray(ref_start),
                               atol=2e-3, rtol=2e-3)
    np.testing.assert_allclose(np.asarray(end_prob), np.asarray(ref_end),
                               atol=2e-3, rtol=2e-3)

    print("KERNEL_OK")
</pallas_src>

<mosaic_0001>
module attributes {stable_mosaic.version = 11 : i64} {
  func.func @uie_head_kernel(%arg0: i32, %arg1: memref<128x768xbf16, #tpu.memory_space<vmem>>, %arg2: memref<768x128xbf16, #tpu.memory_space<vmem>>, %arg3: memref<1x8xf32, #tpu.memory_space<vmem>>, %arg4: memref<128x8xf32, #tpu.memory_space<vmem>>) attributes {dimension_semantics = [#tpu.dimension_semantics<parallel>], iteration_bounds = array<i64: 1>, scalar_prefetch = 0 : i64, scratch_operands = 0 : i64, tpu.core_type = #tpu.core_type<tc>, window_params = [{transform_indices = @transform_0, window_bounds = array<i64: 128, 768>}, {pipeline_mode = #tpu.pipeline_mode<synchronous>, transform_indices = @transform_1, window_bounds = array<i64: 768, 128>}, {pipeline_mode = #tpu.pipeline_mode<synchronous>, transform_indices = @transform_2, window_bounds = array<i64: 1, 8>}, {transform_indices = @transform_3, window_bounds = array<i64: 128, 8>}]} {
    %c0 = arith.constant 0 : index
    %c0_0 = arith.constant 0 : index
    %0 = vector.load %arg1[%c0, %c0_0] : memref<128x768xbf16, #tpu.memory_space<vmem>>, vector<128x768xbf16>
    %c0_1 = arith.constant 0 : index
    %c0_2 = arith.constant 0 : index
    %1 = vector.load %arg2[%c0_1, %c0_2] : memref<768x128xbf16, #tpu.memory_space<vmem>>, vector<768x128xbf16>
    %cst = arith.constant dense<0.000000e+00> : vector<128x128xf32>
    %2 = tpu.matmul %0, %1, %cst {dimension_numbers = #tpu.dot_dimension_numbers<[1], [0], [0], [1], [0, 0, 1, 1], [], []>} : vector<128x768xbf16>, vector<768x128xbf16>, vector<128x128xf32> -> vector<128x128xf32>
    %3 = vector.extract_strided_slice %2 {offsets = [0, 0], sizes = [128, 8], strides = [1, 1]} : vector<128x128xf32> to vector<128x8xf32>
    %4 = vector.extract_strided_slice %3 {offsets = [0, 2], sizes = [128, 1], strides = [1, 1]} : vector<128x8xf32> to vector<128x1xf32>
    %cst_3 = arith.constant 0.00130208337 : f32
    %5 = vector.broadcast %cst_3 : f32 to vector<128x1xf32>
    %6 = arith.mulf %4, %5 : vector<128x1xf32>
    %7 = arith.extf %0 : vector<128x768xbf16> to vector<128x768xf32>
    %8 = arith.mulf %7, %7 : vector<128x768xf32>
    %cst_4 = arith.constant dense<0.000000e+00> : vector<128xf32>
    %9 = vector.multi_reduction <add>, %8, %cst_4 [1] : vector<128x768xf32> to vector<128xf32>
    %10 = vector.shape_cast %9 : vector<128xf32> to vector<128x1xf32>
    %cst_5 = arith.constant 0.00130208337 : f32
    %11 = vector.broadcast %cst_5 : f32 to vector<128x1xf32>
    %12 = arith.mulf %10, %11 : vector<128x1xf32>
    %13 = arith.mulf %6, %6 : vector<128x1xf32>
    %14 = arith.subf %12, %13 : vector<128x1xf32>
    %cst_6 = arith.constant 0.000000e+00 : f32
    %15 = vector.broadcast %cst_6 : f32 to vector<128x1xf32>
    %16 = arith.maximumf %14, %15 : vector<128x1xf32>
    %cst_7 = arith.constant 9.99999996E-13 : f32
    %17 = vector.broadcast %cst_7 : f32 to vector<128x1xf32>
    %18 = arith.addf %16, %17 : vector<128x1xf32>
    %19 = math.rsqrt %18 : vector<128x1xf32>
    %20 = vector.broadcast %19 : vector<128x1xf32> to vector<128x8xf32>
    %21 = arith.mulf %3, %20 : vector<128x8xf32>
    %c0_8 = arith.constant 0 : index
    %c0_9 = arith.constant 0 : index
    %22 = vector.load %arg3[%c0_8, %c0_9] : memref<1x8xf32, #tpu.memory_space<vmem>>, vector<1x8xf32>
    %23 = vector.broadcast %22 : vector<1x8xf32> to vector<128x8xf32>
    %24 = arith.addf %21, %23 : vector<128x8xf32>
    %25 = arith.negf %24 : vector<128x8xf32>
    %26 = math.exp %25 : vector<128x8xf32>
    %cst_10 = arith.constant 1.000000e+00 : f32
    %27 = vector.broadcast %cst_10 : f32 to vector<128x8xf32>
    %28 = arith.addf %27, %26 : vector<128x8xf32>
    %29 = arith.divf %27, %28 : vector<128x8xf32>
    %c0_11 = arith.constant 0 : index
    %c0_12 = arith.constant 0 : index
    %30 = vector.load %arg4[%c0_11, %c0_12] : memref<128x8xf32, #tpu.memory_space<vmem>>, vector<128x8xf32>
    tpu.vector_store %arg4[%c0_11, %c0_12], %29 {strides = array<i32>} : memref<128x8xf32, #tpu.memory_space<vmem>>, vector<128x8xf32>,
    return
  }
  func.func @transform_0(%arg0: i32) -> (i32, i32) {
    %c0_i32 = arith.constant 0 : i32
    %c0_i32_0 = arith.constant 0 : i32
    return %arg0, %c0_i32 : i32, i32
  }
  func.func @transform_1(%arg0: i32) -> (i32, i32) {
    %c0_i32 = arith.constant 0 : i32
    %c0_i32_0 = arith.constant 0 : i32
    %c0_i32_1 = arith.constant 0 : i32
    return %c0_i32, %c0_i32_0 : i32, i32
  }
  func.func @transform_2(%arg0: i32) -> (i32, i32) {
    %c0_i32 = arith.constant 0 : i32
    %c0_i32_0 = arith.constant 0 : i32
    %c0_i32_1 = arith.constant 0 : i32
    return %c0_i32, %c0_i32_0 : i32, i32
  }
  func.func @transform_3(%arg0: i32) -> (i32, i32) {
    %c0_i32 = arith.constant 0 : i32
    %c0_i32_0 = arith.constant 0 : i32
    return %arg0, %c0_i32 : i32, i32
  }
}

</mosaic_0001>

<bundles_post_ra>
// kernel: squeeze.10
= control target key start
LH: loop header
LB: loop body
LE: loop exit
PB: predicated region body
PF: predicated region fallthrough
CT: control target
= control target key end

     0   :  { %s77_s0 = inlined_call_operand.vmem [shape: f32[32], index: 0, kind: input, shape index: {}]   ;;  %s78_s1 = inlined_call_operand.hbm [shape: f32[2,16], index: 1, kind: output, shape index: {}]  }
   0x1   :  { %v6_v0 = vld [vmem:[%s77_s0] sm:$0x1] }
   0x2   :  { %2 = vsyncpa [#allocation1], 0  ;;  %7 = vst [vmem:[#allocation3] sm:$0x1] %v6_v0  ;;  %vm9_vm0 = vcmask 130048   ;;  %s59_s0 = smov 112  }
   0x3   :  { %s60_s8 = smov [#allocation0]  }
   0x4   :  { %s29_s9 = sshll.u32 %s60_s8, 4  ;;  %s30_s9 = int_to_ptr.vmem [resolvable:$true] %s29_s9 }
   0x5   :  { %s37_s10 = scalar_lea.vmem %s30_s9, 32  ;;  %p42_p1 = scmp.lt.s32.totalorder %s30_s9, %s30_s9 }
   0x6   :  { %p38_p0 = scmp.ne.s32.totalorder %s30_s9, %s37_s10  ;;  %p43_p2 = scmp.lt.s32.totalorder %s37_s10, %s37_s10 }
   0x8   :  { %p44_p3 = por %p43_p2, %p42_p1 }
   0x9   :  { %v11_v1 = vld [vmem:[#allocation3] sm:$0x1]  }
   0xa   :  { %v8_v2 = vld [vmem:[#allocation3] sm:$0x1]   ;;  %12 = vrot.lane.b32.xlu0 %v11_v1, %s59_s0  ;;  %p45_p4 = pnand %p44_p3, %p38_p0 }
   0xb   :  { %10 = vst.msk [vmem:[#allocation2] sm:$0x1] %vm9_vm0, %v8_v2  }
  0x7c   :  { %v13_v3 = vpop.permute.xlu0 %12  }
  0x7d   :  { %16 = vst.msk [vmem:[#allocation2 + $0x1] sm:$0x1] %vm9_vm0, %v13_v3  }
  0x84   :  { %v21_v4 = vld [vmem:[#allocation2] sm:$0x3] }
  0x85   :  { %24 = vst [vmem:[#allocation0] sm:$0x3] %v21_v4 }
  0x86   :  { %48 = shalt.err (!%p45_p4)
}
  0x87   :  { %32 = dma.vmem_to_hbm [thread:$0]  %s30_s9, 32, %s78_s1, [#allocation1]  }
  0x88   :  { %57 = dma.done.wait [#allocation1], 32  }
  0x89   :  { %58 = vsyncadd [#allocation1], 4294967264 }
  0x8a   :  { %34 = vsyncpa [#allocation1], 1 }

// kernel: uie_forward.1
= control target key start
LH: loop header
LB: loop body
LE: loop exit
PB: predicated region body
PF: predicated region fallthrough
CT: control target
= control target key end

     0   :  { %vm1609_vm0 = vcmask 64512   ;;  %s3033_s1 = inlined_call_operand.vmem [shape: bf16[768,128], index: 1, kind: input, shape index: {}]   ;;  %s3034_s0 = inlined_call_operand.vmem [shape: bf16[32,768], index: 0, kind: input, shape index: {}]   ;;  %s3035_s2 = inlined_call_operand.vmem [shape: f32[1,8], index: 2, kind: input, shape index: {}]   ;;  %s3036_s3 = inlined_call_operand.vmem [shape: f32[128,8], index: 3, kind: output, shape index: {}]  }
   0x1   :  { %v1954_v0 = vld [vmem:[%s3033_s1 + $0x78] sm:$0xff]   ;;  %v1956_v2 = vld [vmem:[%s3033_s1 + $0x70] sm:$0xff]   ;;  %v1958_v4 = vld [vmem:[%s3033_s1 + $0x68] sm:$0xff]  }
   0x2   :  { %v1955_v1 = vld [vmem:[%s3033_s1 + $0x38] sm:$0xff]   ;;  %1743 = vmatprep.subr.bf16.mxu0 %v1954_v0  ;;  %1935 = vmatprep.subr.bf16.mxu1 %v1954_v0  ;;  %v1957_v3 = vld [vmem:[%s3033_s1 + $0x30] sm:$0xff]   ;;  %v1959_v5 = vld [vmem:[%s3033_s1 + $0x28] sm:$0xff]  }
   0x3   :  { %1744 = vmatpush3.bf16.msra.mxu0 %v1955_v1  ;;  %1943 = vmatpush3.bf16.msra.mxu1 %v1955_v1  ;;  %v1960_v6 = vld [vmem:[%s3033_s1 + $0x60] sm:$0xff]   ;;  %v1962_v8 = vld [vmem:[%s3033_s1 + $0x58] sm:$0xff]   ;;  %v1964_v10 = vld [vmem:[%s3033_s1 + $0x50] sm:$0xff]  }
   0x4   :  { %1745 = vmatprep.subr.bf16.mxu0 %v1956_v2  ;;  %1936 = vmatprep.subr.bf16.mxu1 %v1956_v2  ;;  %v1961_v7 = vld [vmem:[%s3033_s1 + $0x20] sm:$0xff]   ;;  %v1963_v9 = vld [vmem:[%s3033_s1 + $0x18] sm:$0xff]   ;;  %v1965_v17 = vld [vmem:[%s3033_s1 + $0x10] sm:$0xff]  }
   0x5   :  { %v15_v11 = vld [vmem:[%s3034_s0] sm:$0xff]  ;;  %v18_v12 = vld [vmem:[%s3034_s0 + $0x18] sm:$0xff]  ;;  %v1966_v18 = vld [vmem:[%s3033_s1 + $0x48] sm:$0xff]  }
   0x6   :  { %v39_v13 = vld [vmem:[%s3034_s0 + $0xc0] sm:$0xff]  ;;  %v1631_v14 = vcombine.high %v15_v11, %v18_v12  ;;  %v2212_v15 = vld [vmem:[%s3034_s0 + $0xd8] sm:$0xff]  ;;  %v1967_v19 = vld [vmem:[%s3033_s1 + $0x8] sm:$0xff]   ;;  %v994_v26 = vunpack.c.l.bf16 %v15_v11  ;;  %v995_v27 = vunpack.c.h.bf16 %v15_v11  ;;  %v1000_v31 = vunpack.c.l.bf16 %v18_v12 }
   0x7   :  { %1746 = vmatpush3.bf16.msra.mxu0 %v1957_v3  ;;  %1944 = vmatpush3.bf16.msra.mxu1 %v1957_v3  ;;  %v1655_v16 = vcombine.high %v39_v13, %v2212_v15  ;;  %v1968_v20 = vld [vmem:[%s3033_s1 + $0x40] sm:$0xff]   ;;  %v1974_v22 = vld [vmem:[%s3033_s1 + $0xf8] sm:$0xff]   ;;  %v2239_v24 = vld [vmem:[%s3034_s0 + $0x30] sm:$0xff]  ;;  %v1001_v32 = vunpack.c.h.bf16 %v18_v12  ;;  %v1630_v33 = vcombine.low %v15_v11, %v18_v12  ;;  %v1654_v34 = vcombine.low %v39_v13, %v2212_v15 }
   0x8   :  { %1747 = vmatprep.subr.bf16.mxu0 %v1958_v4  ;;  %1937 = vmatprep.subr.bf16.mxu1 %v1958_v4  ;;  %v1969_v21 = vld [vmem:[%s3033_s1] sm:$0xff]   ;;  %v1975_v23 = vld [vmem:[%s3033_s1 + $0x178] sm:$0xff]   ;;  %v2244_v25 = vld [vmem:[%s3034_s0 + $0x48] sm:$0xff]  ;;  %v1042_v36 = vunpack.c.l.bf16 %v39_v13  ;;  %v1043_v37 = vunpack.c.h.bf16 %v39_v13  ;;  %v1048_v38 = vunpack.c.l.bf16 %v2212_v15  ;;  %v1049_v40 = vunpack.c.h.bf16 %v2212_v15 }
   0x9   :  { %719 = vmatprep.mubr.bf16.mxu0 %v1631_v14  ;;  %751 = vmatprep.mubr.bf16.mxu1 %v1655_v16  ;;  %v1976_v28 = vld [vmem:[%s3033_s1 + $0xb8] sm:$0xff]   ;;  %v2255_v30 = vld [vmem:[%s3034_s0 + $0xf0] sm:$0xff]  ;;  %v2261_v35 = vld [vmem:[%s3034_s0 + $0x108] sm:$0xff]  ;;  %v1006_v42 = vunpack.c.l.bf16 %v2239_v24  ;;  %v1007_v43 = vunpack.c.h.bf16 %v2239_v24  ;;  %v1090_v44 = vmul.f32 %v994_v26, %v994_v26  ;;  %v1091_v45 = vmul.f32 %v995_v27, %v995_v27 }
   0xa   :  { %v1977_v29 = vld [vmem:[%s3033_s1 + $0x138] sm:$0xff]   ;;  %v1978_v39 = vld [vmem:[%s3033_s1 + $0xf0] sm:$0xff]   ;;  %v1637_v46 = vcombine.high %v2239_v24, %v2244_v25  ;;  %v1661_v47 = vcombine.high %v2255_v30, %v2261_v35  ;;  %v1096_v48 = vmul.f32 %v1000_v31, %v1000_v31  ;;  %v1097_v49 = vmul.f32 %v1001_v32, %v1001_v32  ;;  %v1986_v57 = vld [vmem:[%s3033_s1 + $0xe8] sm:$0xff]  }
   0xb   :  { %1748 = vmatpush3.bf16.msra.mxu0 %v1959_v5  ;;  %1945 = vmatpush3.bf16.msra.mxu1 %v1959_v5  ;;  %v1979_v41 = vld [vmem:[%s3033_s1 + $0x170] sm:$0xff]   ;;  %v1012_v51 = vunpack.c.l.bf16 %v2244_v25  ;;  %v1013_v52 = vunpack.c.h.bf16 %v2244_v25  ;;  %v1138_v53 = vmul.f32 %v1042_v36, %v1042_v36  ;;  %v1139_v54 = vmul.f32 %v1043_v37, %v1043_v37  ;;  %v1987_v58 = vld [vmem:[%s3033_s1 + $0x168] sm:$0xff]   ;;  %v2294_v60 = vld [vmem:[%s3034_s0 + $0x60] sm:$0xff] }
   0xc   :  { %1749 = vmatprep.subr.bf16.mxu0 %v1960_v6  ;;  %1938 = vmatprep.subr.bf16.mxu1 %v1960_v6  ;;  %v1980_v50 = vld [vmem:[%s3033_s1 + $0xb0] sm:$0xff]   ;;  %v1144_v55 = vmul.f32 %v1048_v38, %v1048_v38  ;;  %v1145_v59 = vmul.f32 %v1049_v40, %v1049_v40  ;;  %v2299_v61 = vld [vmem:[%s3034_s0 + $0x78] sm:$0xff]  ;;  %v1102_v62 = vmul.f32 %v1006_v42, %v1006_v42  ;;  %v1054_v0 = vunpack.c.l.bf16 %v2255_v30  ;;  %v1988_v2 = vld [vmem:[%s3033_s1 + $0xa8] sm:$0xff]  }
   0xd   :  { %v1981_v56 = vld [vmem:[%s3033_s1 + $0x130] sm:$0xff]   ;;  %v1103_v63 = vmul.f32 %v1007_v43, %v1007_v43  ;;  %v1636_v1 = vcombine.low %v2239_v24, %v2244_v25  ;;  %v1989_v3 = vld [vmem:[%s3033_s1 + $0x128] sm:$0xff]   ;;  %v2313_v4 = vld [vmem:[%s3034_s0 + $0x120] sm:$0xff]  ;;  %v2315_v5 = vadd.f32 %v1091_v45, %v1090_v44  ;;  %v1660_v6 = vcombine.low %v2255_v30, %v2261_v35 }
   0xe   :  { %v1990_v11 = vld [vmem:[%s3033_s1 + $0xe0] sm:$0xff]   ;;  %v2328_v12 = vadd.f32 %v1097_v49, %v1096_v48  ;;  %v2330_v13 = vadd.f32 %v1139_v54, %v1138_v53  ;;  %v1060_v14 = vunpack.c.l.bf16 %v2261_v35  ;;  %v1061_v15 = vunpack.c.h.bf16 %v2261_v35  ;;  %v1999_v37 = vld [vmem:[%s3033_s1 + $0x158] sm:$0xff]   ;;  %v2378_v38 = vld [vmem:[%s3034_s0 + $0x90] sm:$0xff] }
   0xf   :  { %1750 = vmatpush3.bf16.msra.mxu0 %v1961_v7  ;;  %1946 = vmatpush3.bf16.msra.mxu1 %v1961_v7  ;;  %v2322_v7 = vld [vmem:[%s3034_s0 + $0x138] sm:$0xff]  ;;  %v1991_v16 = vld [vmem:[%s3033_s1 + $0x160] sm:$0xff]   ;;  %v1019_v24 = vunpack.c.h.bf16 %v2294_v60  ;;  %v1024_v27 = vunpack.c.l.bf16 %v2299_v61  ;;  %v1642_v35 = vcombine.low %v2294_v60, %v2299_v61  ;;  %v2396_v44 = vld [vmem:[%s3034_s0 + $0x150] sm:$0xff]  ;;  %v1031_v48 = vunpack.c.h.bf16 %v2378_v38 }
  0x10   :  { %1751 = vmatprep.subr.bf16.mxu0 %v1962_v8  ;;  %1939 = vmatprep.subr.bf16.mxu1 %v1962_v8  ;;  %v1108_v8 = vmul.f32 %v1012_v51, %v1012_v51  ;;  %v1993_v25 = vld [vmem:[%s3033_s1 + $0x120] sm:$0xff]   ;;  %v2364_v31 = vmul.f32 %v1060_v14, %v1060_v14  ;;  %v1157_v32 = vmul.f32 %v1061_v15, %v1061_v15  ;;  %v1072_v40 = vunpack.c.l.bf16 %v2322_v7  ;;  %v2000_v42 = vld [vmem:[%s3033_s1 + $0x98] sm:$0xff]   ;;  %v2403_v49 = vld [vmem:[%s3034_s0 + $0x168] sm:$0xff] }
  0x11   :  { %v1666_v36 = vcombine.low %v2313_v4, %v2322_v7  ;;  %v2001_v43 = vld [vmem:[%s3033_s1 + $0x118] sm:$0xff]   ;;  %v2002_v54 = vld [vmem:[%s3033_s1 + $0xd0] sm:$0xff]  }
  0x13   :  { %1752 = vmatpush3.bf16.msra.mxu0 %v1963_v9  ;;  %1947 = vmatpush3.bf16.msra.mxu1 %v1963_v9  ;;  %v1109_v9 = vmul.f32 %v1013_v52, %v1013_v52 }
  0x14   :  { %1753 = vmatprep.subr.bf16.mxu0 %v1964_v10  ;;  %1940 = vmatprep.subr.bf16.mxu1 %v1964_v10  ;;  %v1055_v10 = vunpack.c.h.bf16 %v2255_v30  ;;  %v1998_v30 = vld [vmem:[%s3033_s1 + $0xd8] sm:$0xff]  }
  0x15   :  { %v2355_v26 = vadd.f32 %v1109_v9, %v1108_v8 }
  0x17   :  { %1754 = vmatpush3.bf16.msra.mxu0 %v1965_v17  ;;  %1948 = vmatpush3.bf16.msra.mxu1 %v1965_v17  ;;  %v2337_v17 = vadd.f32 %v1103_v63, %v1102_v62  ;;  %v1084_v62 = vunpack.c.l.bf16 %v2403_v49  ;;  %v1085_v63 = vunpack.c.h.bf16 %v2403_v49 }
  0x18   :  { %1755 = vmatprep.subr.bf16.mxu0 %v1966_v18  ;;  %1941 = vmatprep.subr.bf16.mxu1 %v1966_v18  ;;  %v2339_v18 = vadd.f32 %v1145_v59, %v1144_v55  ;;  %v2003_v59 = vld [vmem:[%s3033_s1 + $0x150] sm:$0xff]  }
  0x19   :  { %v1180_v14 = vmul.f32 %v1084_v62, %v1084_v62  ;;  %v1181_v15 = vmul.f32 %v1085_v63, %v1085_v63 }
  0x1b   :  { %1756 = vmatpush3.bf16.msra.mxu0 %v1967_v19  ;;  %1949 = vmatpush3.bf16.msra.mxu1 %v1967_v19  ;;  %v2341_v19 = vmul.f32 %v1054_v0, %v1054_v0  ;;  %v2004_v0 = vld [vmem:[%s3033_s1 + $0x90] sm:$0xff]  }
  0x1c   :  { %1757 = vmatprep.subr.bf16.mxu0 %v1968_v20  ;;  %1942 = vmatprep.subr.bf16.mxu1 %v1968_v20  ;;  %v1992_v20 = vld [vmem:[%s3033_s1 + $0xa0] sm:$0xff]  }
  0x1f   :  { %1758 = vmatpush3.bf16.msra.mxu0 %v1969_v21  ;;  %1950 = vmatpush3.bf16.msra.mxu1 %v1969_v21  ;;  %v1643_v21 = vcombine.high %v2294_v60, %v2299_v61 }
  0x20   :  { %1807 = vmatprep.subr.bf16.mxu1 %v1974_v22  ;;  %1871 = vmatprep.subr.bf16.mxu0 %v1975_v23  ;;  %v1667_v22 = vcombine.high %v2313_v4, %v2322_v7  ;;  %v1018_v23 = vunpack.c.l.bf16 %v2294_v60  ;;  %v1168_v60 = vmul.f32 %v1072_v40, %v1072_v40  ;;  %v2498_v40 = vld [vmem:[%s3034_s0 + $0x50] sm:$0xff] }
  0x22   :  { %720 = vmatmul.mubr.bf16.vlgmr.msra.gmra.mxu0 %v1630_v33  ;;  %752 = vmatmul.mubr.bf16.vlgmr.msra.gmra.mxu1 %v1654_v34  ;;  %v1066_v33 = vunpack.c.l.bf16 %v2313_v4  ;;  %v1067_v34 = vunpack.c.h.bf16 %v2313_v4  ;;  %v1114_v45 = vmul.f32 %v1018_v23, %v1018_v23  ;;  %v1127_v4 = vmul.f32 %v1031_v48, %v1031_v48  ;;  %v2012_v23 = vld [vmem:[%s3033_s1 + $0x88] sm:$0xff]  }
  0x23   :  { %1808 = vmatpush3.bf16.msra.mxu1 %v1976_v28  ;;  %1872 = vmatpush3.bf16.msra.mxu0 %v1977_v29  ;;  %v1025_v28 = vunpack.c.h.bf16 %v2299_v61  ;;  %v2359_v29 = vmul.f32 %v1055_v10, %v1055_v10  ;;  %v2010_v10 = vld [vmem:[%s3033_s1 + $0xc8] sm:$0xff]  }
  0x24   :  { %1809 = vmatprep.subr.bf16.mxu1 %v1978_v39  ;;  %1873 = vmatprep.subr.bf16.mxu0 %v1979_v41  ;;  %v2383_v39 = vld [vmem:[%s3034_s0 + $0xa8] sm:$0xff]  ;;  %v1073_v41 = vunpack.c.h.bf16 %v2322_v7  ;;  %v1162_v55 = vmul.f32 %v1066_v33, %v1066_v33  ;;  %v2015_v33 = vld [vmem:[%s3033_s1 + $0x140] sm:$0xff]  }
  0x25   :  { %727 = vmatprep.mubr.bf16.mxu0 %v1637_v46  ;;  %759 = vmatprep.mubr.bf16.mxu1 %v1661_v47  ;;  %v1115_v46 = vmul.f32 %v1019_v24, %v1019_v24  ;;  %v1030_v47 = vunpack.c.l.bf16 %v2378_v38  ;;  %v1121_v51 = vmul.f32 %v1025_v28, %v1025_v28  ;;  %v1036_v52 = vunpack.c.l.bf16 %v2383_v39  ;;  %v2013_v24 = vld [vmem:[%s3033_s1 + $0x108] sm:$0xff]  }
  0x26   :  { %v1037_v53 = vunpack.c.h.bf16 %v2383_v39  ;;  %v1169_v61 = vmul.f32 %v1073_v41, %v1073_v41  ;;  %v2503_v41 = vld [vmem:[%s3034_s0 + $0x40] sm:$0xff] }
  0x27   :  { %1810 = vmatpush3.bf16.msra.mxu1 %v1980_v50  ;;  %1874 = vmatpush3.bf16.msra.mxu0 %v1981_v56  ;;  %v1120_v50 = vmul.f32 %v1024_v27, %v1024_v27  ;;  %v1163_v56 = vmul.f32 %v1067_v34, %v1067_v34  ;;  %v1132_v7 = vmul.f32 %v1036_v52, %v1036_v52  ;;  %v2477_v34 = vld [vmem:[%s3034_s0 + $0x10] sm:$0xff] }
  0x28   :  { %1811 = vmatprep.subr.bf16.mxu1 %v1986_v57  ;;  %1875 = vmatprep.subr.bf16.mxu0 %v1987_v58  ;;  %v1078_v57 = vunpack.c.l.bf16 %v2396_v44  ;;  %v1079_v58 = vunpack.c.h.bf16 %v2396_v44  ;;  %v1133_v8 = vmul.f32 %v1037_v53, %v1037_v53  ;;  %v2016_v53 = vld [vmem:[%s3033_s1 + $0x80] sm:$0xff]  }
  0x29   :  { %v2458_v27 = vadd.f32 %v1121_v51, %v1120_v50  ;;  %v2460_v28 = vadd.f32 %v1163_v56, %v1162_v55  ;;  %v2529_v50 = vld [vmem:[%s3034_s0 + $0x80] sm:$0xff]  ;;  %v2534_v51 = vld [vmem:[%s3034_s0 + $0x70] sm:$0xff]  ;;  %v1010_v56 = vunpack.c.l.bf16 %v2503_v41 }
  0x2a   :  { %728 = vmatmul.mubr.bf16.gmra.mxu0 %v1636_v1  ;;  %760 = vmatmul.mubr.bf16.gmra.mxu1 %v1660_v6  ;;  %v1649_v1 = vcombine.high %v2378_v38, %v2383_v39  ;;  %v2005_v6 = vld [vmem:[%s3033_s1 + $0x110] sm:$0xff]   ;;  %v1174_v9 = vmul.f32 %v1078_v57, %v1078_v57 }
  0x2b   :  { %1812 = vmatpush3.bf16.msra.mxu1 %v1988_v2  ;;  %1876 = vmatpush3.bf16.msra.mxu0 %v1989_v3  ;;  %v1673_v2 = vcombine.high %v2396_v44, %v2403_v49  ;;  %v1126_v3 = vmul.f32 %v1030_v47, %v1030_v47 }
  0x2c   :  { %1813 = vmatprep.subr.bf16.mxu1 %v1990_v11  ;;  %1877 = vmatprep.subr.bf16.mxu0 %v1991_v16  ;;  %v1175_v11 = vmul.f32 %v1079_v58, %v1079_v58  ;;  %v2011_v16 = vld [vmem:[%s3033_s1 + $0x148] sm:$0xff]  }
  0x2d   :  { %735 = vmatprep.mubr.bf16.mxu0 %v1643_v21  ;;  %767 = vmatprep.mubr.bf16.mxu1 %v1667_v22  ;;  %v2437_v21 = vadd.f32 %v2359_v29, %v2341_v19  ;;  %v2440_v22 = vadd.f32 %v1157_v32, %v2364_v31  ;;  %v2456_v19 = vld [vmem:[%s3034_s0 + $0x20] sm:$0xff]  ;;  %v2462_v29 = vadd.f32 %v1169_v61, %v1168_v60  ;;  %v2552_v58 = vld [vmem:[%s3034_s0 + $0x88] sm:$0xff]  ;;  %v2562_v60 = vld [vmem:[%s3034_s0 + $0xb0] sm:$0xff]  ;;  %v998_v61 = vunpack.c.l.bf16 %v2477_v34 }
  0x2e   :  { %v1672_v31 = vcombine.low %v2396_v44, %v2403_v49  ;;  %v2014_v32 = vld [vmem:[%s3033_s1 + $0xc0] sm:$0xff]   ;;  %v2511_v44 = vadd.f32 %v1175_v11, %v1174_v9  ;;  %v2524_v49 = vld [vmem:[%s3034_s0 + $0x68] sm:$0xff]  ;;  %v2599_v9 = vld [vmem:[%s3034_s0 + $0xd0] sm:$0xff] }
  0x2f   :  { %1814 = vmatpush3.bf16.msra.mxu1 %v1992_v20  ;;  %1878 = vmatpush3.bf16.msra.mxu0 %v1993_v25  ;;  %v2433_v20 = vadd.f32 %v1115_v46, %v1114_v45  ;;  %v2451_v25 = vld [vmem:[%s3034_s0 + $0x8] sm:$0xff]  ;;  %v2513_v45 = vadd.f32 %v1181_v15, %v1180_v14  ;;  %v1002_v14 = vunpack.c.l.bf16 %v2456_v19 }
  0x30   :  { %1815 = vmatprep.subr.bf16.mxu1 %v1998_v30  ;;  %1879 = vmatprep.subr.bf16.mxu0 %v1999_v37  ;;  %v1648_v30 = vcombine.low %v2378_v38, %v2383_v39  ;;  %v2489_v37 = vadd.f32 %v1127_v4, %v1126_v3  ;;  %v2491_v38 = vadd.f32 %v1133_v8, %v1132_v7  ;;  %v997_v52 = vunpack.c.h.bf16 %v2451_v25  ;;  %v2584_v3 = vld [vmem:[%s3034_s0 + $0xc8] sm:$0xff]  ;;  %v2594_v8 = vld [vmem:[%s3034_s0 + $0xe0] sm:$0xff]  ;;  %v2660_v7 = vld [vmem:[%s3034_s0 + $0x130] sm:$0xff] }
  0x31   :  { %v1633_v39 = vcombine.high %v2451_v25, %v2456_v19  ;;  %3037 = vst [vmem:[#allocation2_spill] sm:$0xff] %v2511_v44  ;;  %3038 = vst [vmem:[#allocation3_spill] sm:$0xff] %v2513_v45  ;;  %v1632_v47 = vcombine.low %v2451_v25, %v2456_v19  ;;  %v999_v4 = vunpack.c.h.bf16 %v2477_v34  ;;  %v2643_v15 = vld [vmem:[%s3034_s0 + $0x128] sm:$0xff]  ;;  %v1098_v48 = vmul.f32 %v1002_v14, %v1002_v14 }
  0x32   :  { %736 = vmatmul.mubr.bf16.gmra.mxu0 %v1642_v35  ;;  %768 = vmatmul.mubr.bf16.gmra.mxu1 %v1666_v36  ;;  %v2482_v35 = vld [vmem:[%s3034_s0 + $0x28] sm:$0xff]  ;;  %v2487_v36 = vld [vmem:[%s3034_s0 + $0x38] sm:$0xff] }
  0x33   :  { %1816 = vmatpush3.bf16.msra.mxu1 %v2000_v42  ;;  %1880 = vmatpush3.bf16.msra.mxu0 %v2001_v43  ;;  %v2508_v42 = vld [vmem:[%s3034_s0 + $0x58] sm:$0xff]  ;;  %v996_v43 = vunpack.c.l.bf16 %v2451_v25  ;;  %v1635_v46 = vcombine.high %v2477_v34, %v2482_v35  ;;  %v1008_v63 = vunpack.c.l.bf16 %v2487_v36  ;;  %v1095_v55 = vmul.f32 %v999_v4, %v999_v4 }
  0x34   :  { %1817 = vmatprep.subr.bf16.mxu1 %v2002_v54  ;;  %1881 = vmatprep.subr.bf16.mxu0 %v2003_v59  ;;  %v2017_v54 = vld [vmem:[%s3033_s1 + $0x100] sm:$0xff]   ;;  %v2557_v59 = vld [vmem:[%s3034_s0 + $0x98] sm:$0xff]  ;;  %v1194_v25 = vadd.f32 %v2328_v12, %v1098_v48 }
  0x35   :  { %743 = vmatprep.mubr.bf16.mxu0 %v1649_v1  ;;  %775 = vmatprep.mubr.bf16.mxu1 %v1673_v2  ;;  %v2574_v1 = vld [vmem:[%s3034_s0 + $0xa0] sm:$0xff]  ;;  %v2579_v2 = vld [vmem:[%s3034_s0 + $0xb8] sm:$0xff]  ;;  %v1092_v11 = vmul.f32 %v996_v43, %v996_v43 }
  0x37   :  { %1818 = vmatpush3.bf16.msra.mxu1 %v2004_v0  ;;  %1882 = vmatpush3.bf16.msra.mxu0 %v2005_v6  ;;  %v2665_v0 = vld [vmem:[%s3034_s0 + $0x148] sm:$0xff]  ;;  %v1005_v6 = vunpack.c.h.bf16 %v2482_v35  ;;  %v1187_v43 = vadd.f32 %v2315_v5, %v1092_v11  ;;  %v3041_v5 = vcombine.high %v2503_v41, %v2508_v42  ;;  %v1015_v11 = vunpack.c.h.bf16 %v2498_v40 }
  0x38   :  { %1819 = vmatprep.subr.bf16.mxu1 %v2010_v10  ;;  %1883 = vmatprep.subr.bf16.mxu0 %v2011_v16  ;;  %v2604_v10 = vld [vmem:[%s3034_s0 + $0xe8] sm:$0xff]  ;;  %v2638_v16 = vld [vmem:[%s3034_s0 + $0x118] sm:$0xff] }
  0x39   :  { %v1111_v12 = vmul.f32 %v1015_v11, %v1015_v11  ;;  %v1027_v11 = vunpack.c.h.bf16 %v2529_v50 }
  0x3a   :  { %744 = vmatmul.mubr.bf16.gmra.mxu0 %v1648_v30  ;;  %776 = vmatmul.mubr.bf16.gmra.mxu1 %v1672_v31  ;;  %v2621_v30 = vld [vmem:[%s3034_s0 + $0x110] sm:$0xff]  ;;  %v2626_v31 = vld [vmem:[%s3034_s0 + $0x100] sm:$0xff] }
  0x3b   :  { %1820 = vmatpush3.bf16.msra.mxu1 %v2012_v23  ;;  %1884 = vmatpush3.bf16.msra.mxu0 %v2013_v24  ;;  %v2616_v24 = vld [vmem:[%s3034_s0 + $0xf8] sm:$0xff]  ;;  %v1093_v23 = vmul.f32 %v997_v52, %v997_v52  ;;  %v3039_v52 = vcombine.low %v2477_v34, %v2482_v35  ;;  %v1104_v34 = vmul.f32 %v1008_v63, %v1008_v63 }
  0x3c   :  { %1821 = vmatprep.subr.bf16.mxu1 %v2014_v32  ;;  %1885 = vmatprep.subr.bf16.mxu0 %v2015_v33  ;;  %v1003_v32 = vunpack.c.h.bf16 %v2456_v19  ;;  %v1101_v33 = vmul.f32 %v1005_v6, %v1005_v6  ;;  %v1011_v19 = vunpack.c.h.bf16 %v2503_v41  ;;  %v1014_v6 = vunpack.c.l.bf16 %v2498_v40 }
  0x3d   :  { %816 = vmatprep.mubr.bf16.mxu1 %v1633_v39  ;;  %913 = vmatprep.mubr.bf16.mxu0 %v1635_v46  ;;  %v2648_v39 = vld [vmem:[%s3034_s0 + $0x140] sm:$0xff]  ;;  %v1004_v46 = vunpack.c.l.bf16 %v2482_v35  ;;  %v1188_v4 = vadd.f32 %v1187_v43, %v1093_v23  ;;  %v1017_v23 = vunpack.c.h.bf16 %v2508_v42 }
  0x3e   :  { %v1099_v62 = vmul.f32 %v1003_v32, %v1003_v32  ;;  %v1110_v43 = vmul.f32 %v1014_v6, %v1014_v6 }
  0x3f   :  { %1822 = vmatpush3.bf16.msra.mxu1 %v2016_v53  ;;  %1886 = vmatpush3.bf16.msra.mxu0 %v2017_v54  ;;  %v1009_v53 = vunpack.c.h.bf16 %v2487_v36  ;;  %v1094_v54 = vmul.f32 %v998_v61, %v998_v61  ;;  %v1100_v57 = vmul.f32 %v1004_v46, %v1004_v46  ;;  %v3040_v61 = vcombine.high %v2487_v36, %v2498_v40 }
  0x40   :  { %v1195_v32 = vadd.f32 %v1194_v25, %v1099_v62  ;;  %v1107_v46 = vmul.f32 %v1011_v19, %v1011_v19  ;;  %v1113_v45 = vmul.f32 %v1017_v23, %v1017_v23  ;;  %v1208_v44 = vadd.f32 %v2355_v26, %v1110_v43 }
  0x41   :  { %v1105_v35 = vmul.f32 %v1009_v53, %v1009_v53  ;;  %v1189_v14 = vadd.f32 %v1188_v4, %v1094_v54  ;;  %v1021_v62 = vunpack.c.h.bf16 %v2524_v49  ;;  %v1022_v4 = vunpack.c.l.bf16 %v2534_v51 }
  0x42   :  { %817 = vmatmul.mubr.bf16.vlgmr.msra.gmra.mxu1 %v1632_v47  ;;  %914 = vmatmul.mubr.bf16.vlgmr.msra.gmra.mxu0 %v3039_v52  ;;  %v1106_v47 = vmul.f32 %v1010_v56, %v1010_v56  ;;  %v1201_v52 = vadd.f32 %v2337_v17, %v1104_v34  ;;  %v1020_v56 = vunpack.c.l.bf16 %v2524_v49  ;;  %v1023_v25 = vunpack.c.h.bf16 %v2534_v51 }
  0x43   :  { %824 = vmatprep.mubr.bf16.mxu1 %v3040_v61  ;;  %921 = vmatprep.mubr.bf16.mxu0 %v3041_v5  ;;  %v1016_v61 = vunpack.c.l.bf16 %v2508_v42  ;;  %v1190_v48 = vadd.f32 %v1189_v14, %v1095_v55  ;;  %v1196_v5 = vadd.f32 %v1195_v32, %v1100_v57  ;;  %v3042_v55 = vcombine.low %v2487_v36, %v2498_v40 }
  0x44   :  { %v1202_v63 = vadd.f32 %v1201_v52, %v1105_v35  ;;  %v3043_v57 = vcombine.low %v2503_v41, %v2508_v42  ;;  %v1209_v19 = vadd.f32 %v1208_v44, %v1111_v12  ;;  %v1116_v34 = vmul.f32 %v1020_v56, %v1020_v56 }
  0x45   :  { %v1112_v53 = vmul.f32 %v1016_v61, %v1016_v61  ;;  %1191 = vadd.xlane.f32.xlu0 %v1190_v48  ;;  %v1197_v54 = vadd.f32 %v1196_v5, %v1101_v33  ;;  %v1117_v26 = vmul.f32 %v1021_v62, %v1021_v62  ;;  %v1026_v35 = vunpack.c.l.bf16 %v2529_v50 }
  0x46   :  { %v1203_v17 = vadd.f32 %v1202_v63, %v1106_v47  ;;  %v3044_v33 = vcombine.high %v2524_v49, %v2529_v50  ;;  %v3045_v47 = vcombine.high %v2534_v51, %v2552_v58  ;;  %v1118_v36 = vmul.f32 %v1022_v4, %v1022_v4 }
  0x47   :  { %v1119_v40 = vmul.f32 %v1023_v25, %v1023_v25  ;;  %v1210_v41 = vadd.f32 %v1209_v19, %v1112_v53  ;;  %v1215_v42 = vadd.f32 %v2433_v20, %v1116_v34  ;;  %v1028_v44 = vunpack.c.l.bf16 %v2552_v58 }
  0x48   :  { %v1204_v6 = vadd.f32 %v1203_v17, %v1107_v46  ;;  %v1029_v14 = vunpack.c.h.bf16 %v2552_v58  ;;  %v1122_v32 = vmul.f32 %v1026_v35, %v1026_v35  ;;  %v1123_v52 = vmul.f32 %v1027_v11, %v1027_v11 }
  0x49   :  { %1198 = vadd.xlane.f32.xlu0 %v1197_v54  ;;  %v1032_v61 = vunpack.c.l.bf16 %v2557_v59  ;;  %v1033_v23 = vunpack.c.h.bf16 %v2557_v59  ;;  %v1211_v46 = vadd.f32 %v1210_v41, %v1113_v45  ;;  %v1216_v43 = vadd.f32 %v1215_v42, %v1117_v26 }
  0x4a   :  { %825 = vmatmul.mubr.bf16.gmra.mxu1 %v3042_v55  ;;  %922 = vmatmul.mubr.bf16.gmra.mxu0 %v3043_v57  ;;  %v1124_v12 = vmul.f32 %v1028_v44, %v1028_v44  ;;  %v1125_v48 = vmul.f32 %v1029_v14, %v1029_v14  ;;  %v1222_v5 = vadd.f32 %v2458_v27, %v1122_v32  ;;  %v1034_v20 = vunpack.c.l.bf16 %v2574_v1 }
  0x4b   :  { %832 = vmatprep.mubr.bf16.mxu1 %v3044_v33  ;;  %929 = vmatprep.mubr.bf16.mxu0 %v3045_v47  ;;  %v1035_v63 = vunpack.c.h.bf16 %v2574_v1  ;;  %v1128_v56 = vmul.f32 %v1032_v61, %v1032_v61  ;;  %v1217_v53 = vadd.f32 %v1216_v43, %v1118_v36  ;;  %v1129_v62 = vmul.f32 %v1033_v23, %v1033_v23 }
  0x4c   :  { %1205 = vadd.xlane.f32.xlu1 %v1204_v6  ;;  %v1038_v54 = vunpack.c.l.bf16 %v2562_v60  ;;  %v1039_v17 = vunpack.c.h.bf16 %v2562_v60  ;;  %v1223_v4 = vadd.f32 %v1222_v5, %v1123_v52  ;;  %v1130_v25 = vmul.f32 %v1034_v20, %v1034_v20 }
  0x4d   :  { %v1131_v45 = vmul.f32 %v1035_v63, %v1035_v63  ;;  %v1229_v55 = vadd.f32 %v2489_v37, %v1128_v56  ;;  %v3046_v27 = vcombine.low %v2524_v49, %v2529_v50  ;;  %v3047_v57 = vcombine.low %v2534_v51, %v2552_v58 }
  0x4e   :  { %v1218_v19 = vadd.f32 %v1217_v53, %v1119_v40  ;;  %v1040_v34 = vunpack.c.l.bf16 %v2579_v2  ;;  %v1041_v26 = vunpack.c.h.bf16 %v2579_v2  ;;  %v1134_v35 = vmul.f32 %v1038_v54, %v1038_v54 }
  0x4f   :  { %v3048_v33 = vcombine.high %v2557_v59, %v2562_v60  ;;  %v3049_v37 = vcombine.high %v2574_v1, %v2579_v2  ;;  %v1224_v49 = vadd.f32 %v1223_v4, %v1124_v12  ;;  %v1230_v50 = vadd.f32 %v1229_v55, %v1129_v62 }
  0x50   :  { %1212 = vadd.xlane.f32.xlu1 %v1211_v46  ;;  %v1135_v47 = vmul.f32 %v1039_v17, %v1039_v17  ;;  %v1044_v51 = vunpack.c.l.bf16 %v2584_v3  ;;  %1219 = vadd.xlane.f32.xlu0 %v1218_v19  ;;  %v1136_v58 = vmul.f32 %v1040_v34, %v1040_v34  ;;  %v1137_v6 = vmul.f32 %v1041_v26, %v1041_v26 }
  0x51   :  { %v1236_v36 = vadd.f32 %v2491_v38, %v1134_v35  ;;  %v1045_v40 = vunpack.c.h.bf16 %v2584_v3  ;;  %v1225_v11 = vadd.f32 %v1224_v49, %v1125_v48  ;;  %v1231_v41 = vadd.f32 %v1230_v50, %v1130_v25 }
  0x52   :  { %833 = vmatmul.mubr.bf16.gmra.mxu1 %v3046_v27  ;;  %930 = vmatmul.mubr.bf16.gmra.mxu0 %v3047_v57  ;;  %v1046_v42 = vunpack.c.l.bf16 %v2599_v9  ;;  %v1047_v44 = vunpack.c.h.bf16 %v2599_v9  ;;  %v1140_v32 = vmul.f32 %v1044_v51, %v1044_v51  ;;  %v1050_v61 = vunpack.c.l.bf16 %v2594_v8 }
  0x53   :  { %840 = vmatprep.mubr.bf16.mxu1 %v3048_v33  ;;  %937 = vmatprep.mubr.bf16.mxu0 %v3049_v37  ;;  %v1237_v14 = vadd.f32 %v1236_v36, %v1135_v47  ;;  %v1141_v52 = vmul.f32 %v1045_v40, %v1045_v40  ;;  %v1232_v23 = vadd.f32 %v1231_v41, %v1131_v45  ;;  %v1051_v12 = vunpack.c.h.bf16 %v2594_v8 }
  0x54   :  { %1226 = vadd.xlane.f32.xlu1 %v1225_v11  ;;  %v1142_v46 = vmul.f32 %v1046_v42, %v1046_v42  ;;  %v1143_v43 = vmul.f32 %v1047_v44, %v1047_v44  ;;  %v1243_v5 = vadd.f32 %v2330_v13, %v1140_v32  ;;  %v1052_v48 = vunpack.c.l.bf16 %v2604_v10 }
  0x55   :  { %v1238_v38 = vadd.f32 %v1237_v14, %v1136_v58  ;;  %v1053_v20 = vunpack.c.h.bf16 %v2604_v10  ;;  %1233 = vadd.xlane.f32.xlu0 %v1232_v23  ;;  %v1146_v63 = vmul.f32 %v1050_v61, %v1050_v61  ;;  %v1147_v56 = vmul.f32 %v1051_v12, %v1051_v12 }
  0x56   :  { %v1056_v53 = vunpack.c.l.bf16 %v2616_v24  ;;  %v1057_v62 = vunpack.c.h.bf16 %v2616_v24  ;;  %v3050_v54 = vcombine.low %v2557_v59, %v2562_v60  ;;  %v3051_v17 = vcombine.low %v2574_v1, %v2579_v2 }
  0x57   :  { %v1239_v13 = vadd.f32 %v1238_v38, %v1137_v6  ;;  %v1244_v4 = vadd.f32 %v1243_v5, %v1141_v52  ;;  %v1148_v25 = vmul.f32 %v1052_v48, %v1052_v48  ;;  %v1058_v45 = vunpack.c.l.bf16 %v2626_v31 }
  0x58   :  { %v3052_v55 = vcombine.high %v2584_v3, %v2594_v8  ;;  %v3053_v27 = vcombine.high %v2599_v9, %v2604_v10  ;;  %v1149_v57 = vmul.f32 %v1053_v20, %v1053_v20  ;;  %v1250_v59 = vadd.f32 %v2339_v18, %v1146_v63 }
  0x59   :  { %v1059_v60 = vunpack.c.h.bf16 %v2626_v31  ;;  %v1152_v1 = vmul.f32 %v1056_v53, %v1056_v53  ;;  %1240 = vadd.xlane.f32.xlu1 %v1239_v13  ;;  %v1245_v2 = vadd.f32 %v1244_v4, %v1142_v46  ;;  %v1153_v19 = vmul.f32 %v1057_v62, %v1057_v62  ;;  %v59_v4 = vld [vmem:[%s3034_s0 + $0x160] sm:$0xff] }
  0x5a   :  { %841 = vmatmul.mubr.bf16.gmra.mxu1 %v3050_v54  ;;  %938 = vmatmul.mubr.bf16.gmra.mxu0 %v3051_v17  ;;  %v1154_v34 = vmul.f32 %v1058_v45, %v1058_v45  ;;  %v1062_v26 = vunpack.c.l.bf16 %v2621_v30  ;;  %v1251_v35 = vadd.f32 %v1250_v59, %v1147_v56  ;;  %v1063_v49 = vunpack.c.h.bf16 %v2621_v30 }
  0x5b   :  { %848 = vmatprep.mubr.bf16.mxu1 %v3052_v55  ;;  %945 = vmatprep.mubr.bf16.mxu0 %v3053_v27  ;;  %v1155_v33 = vmul.f32 %v1059_v60, %v1059_v60  ;;  %v1257_v37 = vadd.f32 %v2437_v21, %v1152_v1  ;;  %v1246_v50 = vadd.f32 %v1245_v2, %v1143_v43  ;;  %v1064_v47 = vunpack.c.l.bf16 %v2638_v16 }
  0x5c   :  { %v1065_v18 = vunpack.c.h.bf16 %v2638_v16  ;;  %v1158_v51 = vmul.f32 %v1062_v26, %v1062_v26  ;;  %v1252_v58 = vadd.f32 %v1251_v35, %v1148_v25  ;;  %v1159_v36 = vmul.f32 %v1063_v49, %v1063_v49  ;;  %v62_v35 = vld [vmem:[%s3034_s0 + $0x178] sm:$0xff] }
  0x5d   :  { %v1258_v6 = vadd.f32 %v1257_v37, %v1153_v19  ;;  %v1068_v40 = vunpack.c.l.bf16 %v2643_v15  ;;  %1247 = vadd.xlane.f32.xlu0 %v1246_v50  ;;  %v1160_v11 = vmul.f32 %v1064_v47, %v1064_v47  ;;  %v1069_v21 = vunpack.c.h.bf16 %v2643_v15  ;;  %v3058_v50 = vld [vmem:[#allocation2_spill] sm:$0xff] }
  0x5e   :  { %v1161_v41 = vmul.f32 %v1065_v18, %v1065_v18  ;;  %v1264_v42 = vadd.f32 %v2440_v22, %v1158_v51  ;;  %v1253_v44 = vadd.f32 %v1252_v58, %v1149_v57  ;;  %v1070_v32 = vunpack.c.l.bf16 %v2660_v7 }
  0x5f   :  { %v1259_v14 = vadd.f32 %v1258_v6, %v1154_v34  ;;  %v1071_v52 = vunpack.c.h.bf16 %v2660_v7  ;;  %v3054_v61 = vcombine.low %v2584_v3, %v2594_v8  ;;  %v3055_v23 = vcombine.low %v2599_v9, %v2604_v10  ;;  %v2799_v9 = vld [vmem:[%s3034_s0 + $0x158] sm:$0xff] }
  0x60   :  { %v1265_v46 = vadd.f32 %v1264_v42, %v1159_v36  ;;  %v1164_v43 = vmul.f32 %v1068_v40, %v1068_v40  ;;  %v1165_v12 = vmul.f32 %v1069_v21, %v1069_v21  ;;  %v1074_v22 = vunpack.c.l.bf16 %v2648_v39  ;;  %1254 = vadd.xlane.f32.xlu1 %v1253_v44  ;;  %v3063_v21 = vld [vmem:[#allocation3_spill] sm:$0xff] }
  0x61   :  { %v3056_v38 = vcombine.high %v2616_v24, %v2621_v30  ;;  %v3057_v5 = vcombine.high %v2626_v31, %v2638_v16  ;;  %v1260_v48 = vadd.f32 %v1259_v14, %v1155_v33  ;;  %v1166_v3 = vmul.f32 %v1070_v32, %v1070_v32 }
  0x62   :  { %849 = vmatmul.mubr.bf16.gmra.mxu1 %v3054_v61  ;;  %946 = vmatmul.mubr.bf16.gmra.mxu0 %v3055_v23  ;;  %v1167_v8 = vmul.f32 %v1071_v52, %v1071_v52  ;;  %v1075_v20 = vunpack.c.h.bf16 %v2648_v39  ;;  %v1266_v10 = vadd.f32 %v1265_v46, %v1160_v11  ;;  %v1271_v63 = vadd.f32 %v2460_v28, %v1164_v43  ;;  %v61_v28 = vld [vmem:[%s3034_s0 + $0x170] sm:$0xff] }
  0x63   :  { %856 = vmatprep.mubr.bf16.mxu1 %v3056_v38  ;;  %953 = vmatprep.mubr.bf16.mxu0 %v3057_v5  ;;  %v1076_v56 = vunpack.c.l.bf16 %v2665_v0  ;;  %v1077_v53 = vunpack.c.h.bf16 %v2665_v0  ;;  %v1170_v62 = vmul.f32 %v1074_v22, %v1074_v22  ;;  %v1080_v17 = vunpack.c.l.bf16 %v2799_v9 }
  0x64   :  { %1261 = vadd.xlane.f32.xlu0 %v1260_v48  ;;  %v1171_v54 = vmul.f32 %v1075_v20, %v1075_v20  ;;  %v1081_v13 = vunpack.c.h.bf16 %v2799_v9  ;;  %v1267_v25 = vadd.f32 %v1266_v10, %v1161_v41  ;;  %v1272_v45 = vadd.f32 %v1271_v63, %v1165_v12 }
  0x65   :  { %v1172_v55 = vmul.f32 %v1076_v56, %v1076_v56  ;;  %v1173_v27 = vmul.f32 %v1077_v53, %v1077_v53  ;;  %v1278_v57 = vadd.f32 %v2462_v29, %v1170_v62  ;;  %v1082_v59 = vunpack.c.l.bf16 %v59_v4 }
  0x66   :  { %v1083_v60 = vunpack.c.h.bf16 %v59_v4  ;;  %v1176_v1 = vmul.f32 %v1080_v17, %v1080_v17  ;;  %1268 = vadd.xlane.f32.xlu1 %v1267_v25  ;;  %v1273_v2 = vadd.f32 %v1272_v45, %v1166_v3  ;;  %v1177_v19 = vmul.f32 %v1081_v13, %v1081_v13 }
  0x67   :  { %v1086_v34 = vunpack.c.l.bf16 %v61_v28  ;;  %v1087_v26 = vunpack.c.h.bf16 %v61_v28  ;;  %v1279_v33 = vadd.f32 %v1278_v57, %v1171_v54  ;;  %v1178_v37 = vmul.f32 %v1082_v59, %v1082_v59 }
  0x68   :  { %v1179_v49 = vmul.f32 %v1083_v60, %v1083_v60  ;;  %v1285_v47 = vadd.f32 %v3058_v50, %v1176_v1  ;;  %v3059_v29 = vcombine.low %v2616_v24, %v2621_v30  ;;  %v3060_v18 = vcombine.low %v2626_v31, %v2638_v16 }
  0x69   :  { %v1274_v51 = vadd.f32 %v1273_v2, %v1167_v8  ;;  %v1088_v58 = vunpack.c.l.bf16 %v62_v35  ;;  %v1089_v6 = vunpack.c.h.bf16 %v62_v35  ;;  %v1182_v36 = vmul.f32 %v1086_v34, %v1086_v34 }
  0x6a   :  { %857 = vmatmul.mubr.bf16.gmra.mxu1 %v3059_v29  ;;  %954 = vmatmul.mubr.bf16.gmra.mxu0 %v3060_v18  ;;  %v3061_v40 = vcombine.high %v2643_v15, %v2648_v39  ;;  %v3062_v11 = vcombine.high %v2660_v7, %v2665_v0  ;;  %v1280_v41 = vadd.f32 %v1279_v33, %v1172_v55 }
  0x6b   :  { %v1286_v42 = vadd.f32 %v1285_v47, %v1177_v19  ;;  %v1183_v24 = vmul.f32 %v1087_v26, %v1087_v26  ;;  %1275 = vadd.xlane.f32.xlu0 %v1274_v51  ;;  %v1184_v30 = vmul.f32 %v1088_v58, %v1088_v58  ;;  %v1292_v16 = vadd.f32 %v3063_v21, %v1182_v36 }
  0x6c   :  { %864 = vmatprep.mubr.bf16.mxu1 %v3061_v40  ;;  %961 = vmatprep.mubr.bf16.mxu0 %v3062_v11  ;;  %v1281_v31 = vadd.f32 %v1280_v41, %v1173_v27  ;;  %v1668_v14 = vcombine.low %v2643_v15, %v2648_v39  ;;  %v1670_v32 = vcombine.low %v2660_v7, %v2665_v0  ;;  %v2146_v0 = vmov 2  }
  0x6d   :  { %v1287_v44 = vadd.f32 %v1286_v42, %v1178_v37  ;;  %v1185_v52 = vmul.f32 %v1089_v6, %v1089_v6  ;;  %v1293_v61 = vadd.f32 %v1292_v16, %v1183_v24  ;;  %v1675_v23 = vcombine.high %v2799_v9, %v61_v28  ;;  %1952 = vset.pattern.permute.xlu0 %v2146_v0 }
  0x6e   :  { %v1677_v46 = vcombine.high %v59_v4, %v62_v35  ;;  %1282 = vadd.xlane.f32.xlu1 %v1281_v31  ;;  %v1674_v15 = vcombine.low %v2799_v9, %v61_v28  ;;  %v1676_v39 = vcombine.low %v59_v4, %v62_v35 }
  0x6f   :  { %v1288_v43 = vadd.f32 %v1287_v44, %v1179_v49  ;;  %v1294_v12 = vadd.f32 %v1293_v61, %v1184_v30  ;;  %1953 = vset.pattern.permute.xlu1 %v2146_v0 }
  0x71   :  { %1289 = vadd.xlane.f32.xlu0 %v1288_v43  ;;  %v1295_v22 = vadd.f32 %v1294_v12, %v1185_v52 }
  0x72   :  { %865 = vmatmul.mubr.bf16.gmra.mxu1 %v1668_v14  ;;  %962 = vmatmul.mubr.bf16.gmra.mxu0 %v1670_v32 }
  0x73   :  { %872 = vmatprep.mubr.bf16.mxu1 %v1675_v23  ;;  %969 = vmatprep.mubr.bf16.mxu0 %v1677_v46 }
  0x74   :  { %1296 = vadd.xlane.f32.xlu1 %v1295_v22 }
  0x7a   :  { %873 = vmatmul.mubr.bf16.gmra.mxu1 %v1674_v15  ;;  %970 = vmatmul.mubr.bf16.gmra.mxu0 %v1676_v39 }
  0xce   :  { %v1192_v24 = vpop.xlane.xlu0 %1191 }
  0xcf   :  { %v1298_v15 = vmul.f32 0.0013020834, %v1192_v24 }
  0xd2   :  { %v1199_v39 = vpop.xlane.xlu0 %1198 }
  0xe2   :  { %v1759_v7 = vpop.f32.mrf.mxu0  ;;  %v1783_v38 = vpop.f32.mrf.mxu1 }
  0xe4   :  { %v1760_v5 = vpop.f32.mrf.mxu0  ;;  %v1784_v48 = vpop.f32.mrf.mxu1 }
  0xe5   :  { %v2836_v3 = vadd.f32 %v1784_v48, %v1783_v38  ;;  %v1761_v41 = vadd.f32 %v1760_v5, %v1759_v7 }
  0xe6   :  { %v1762_v8 = vpop.f32.mrf.mxu0  ;;  %v1786_v20 = vpop.f32.mrf.mxu1 }
  0xe8   :  { %v1763_v10 = vpop.f32.mrf.mxu0  ;;  %v1787_v63 = vpop.f32.mrf.mxu1 }
  0xe9   :  { %v2838_v56 = vadd.f32 %v1787_v63, %v1786_v20  ;;  %v1764_v32 = vadd.f32 %v1763_v10, %v1762_v8  ;;  %v1206_v63 = vpop.xlane.xlu1 %1205 }
  0xea   :  { %v1765_v53 = vpop.f32.mrf.mxu0  ;;  %v1789_v9 = vpop.f32.mrf.mxu1 }
  0xec   :  { %v1766_v62 = vpop.f32.mrf.mxu0  ;;  %v1790_v54 = vpop.f32.mrf.mxu1 }
  0xed   :  { %v2840_v17 = vadd.f32 %v1790_v54, %v1789_v9  ;;  %v1767_v38 = vadd.f32 %v1766_v62, %v1765_v53  ;;  %v1299_v9 = vmul.f32 0.0013020834, %v1199_v39  ;;  %v1213_v24 = vpop.xlane.xlu1 %1212 }
  0xee   :  { %v1768_v13 = vpop.f32.mrf.mxu0  ;;  %v1792_v4 = vpop.f32.mrf.mxu1 }
  0xf0   :  { %v1769_v25 = vpop.f32.mrf.mxu0  ;;  %v1793_v45 = vpop.f32.mrf.mxu1 }
  0xf1   :  { %v2842_v55 = vadd.f32 %v1793_v45, %v1792_v4 }
  0xf2   :  { %v2844_v27 = vpop.f32.mrf.mxu0  ;;  %v1795_v28 = vpop.f32.mrf.mxu1 }
  0xf4   :  { %v2846_v57 = vpop.f32.mrf.mxu0  ;;  %v1796_v59 = vpop.f32.mrf.mxu1 }
  0xf5   :  { %v2848_v60 = vadd.f32 %v1796_v59, %v1795_v28  ;;  %v1770_v59 = vadd.f32 %v1769_v25, %v1768_v13 }
  0xf6   :  { %v2850_v1 = vpop.f32.mrf.mxu0  ;;  %v1798_v2 = vpop.f32.mrf.mxu1 }
  0xf8   :  { %v2852_v19 = vpop.f32.mrf.mxu0  ;;  %v1799_v34 = vpop.f32.mrf.mxu1 }
  0xf9   :  { %v2854_v26 = vadd.f32 %v1799_v34, %v1798_v2 }
  0xfa   :  { %v2856_v35 = vpop.f32.mrf.mxu0  ;;  %v1801_v33 = vpop.f32.mrf.mxu1 }
  0xfc   :  { %v2858_v37 = vpop.f32.mrf.mxu0  ;;  %v1802_v49 = vpop.f32.mrf.mxu1 }
  0xfd   :  { %v2860_v50 = vadd.f32 %v1802_v49, %v1801_v33 }
  0xfe   :  { %v2862_v47 = vpop.f32.mrf.mxu0  ;;  %v1804_v29 = vpop.f32.mrf.mxu1 }
 0x100   :  { %v2864_v18 = vpop.f32.mrf.mxu0  ;;  %v1805_v51 = vpop.f32.mrf.mxu1 }
 0x101   :  { %v2866_v58 = vadd.f32 %v1805_v51, %v1804_v29 }
 0x102   :  { %v1823_v6 = vpop.f32.mrf.mxu1  ;;  %v1887_v36 = vpop.f32.mrf.mxu0 }
 0x104   :  { %v1824_v40 = vpop.f32.mrf.mxu1  ;;  %v1888_v11 = vpop.f32.mrf.mxu0 }
 0x105   :  { %v1825_v42 = vadd.f32 %v1824_v40, %v1823_v6  ;;  %v1889_v31 = vadd.f32 %v1888_v11, %v1887_v36  ;;  %v1300_v36 = vmul.f32 0.0013020834, %v1206_v63 }
 0x106   :  { %v1826_v30 = vpop.f32.mrf.mxu1  ;;  %v1890_v21 = vpop.f32.mrf.mxu0 }
 0x107   :  { %v819_v16 = vadd.f32 %v1825_v42, %v1761_v41 }
 0x108   :  { %v1827_v44 = vpop.f32.mrf.mxu1  ;;  %v1891_v14 = vpop.f32.mrf.mxu0 }
 0x109   :  { %v2868_v52 = vadd.f32 %v1889_v31, %v819_v16  ;;  %v1828_v61 = vadd.f32 %v1827_v44, %v1826_v30  ;;  %v1892_v22 = vadd.f32 %v1891_v14, %v1890_v21  ;;  %v1773_v31 = vadd.f32 %v2846_v57, %v2844_v27  ;;  %v1220_v27 = vpop.xlane.xlu0 %1219 }
 0x10a   :  { %v1829_v23 = vpop.f32.mrf.mxu1  ;;  %v1893_v46 = vpop.f32.mrf.mxu0 }
 0x10b   :  { %v978_v43 = vmul.f32 0.0013020834, %v2868_v52  ;;  %v822_v12 = vadd.f32 %v1828_v61, %v1764_v32 }
 0x10c   :  { %v1830_v0 = vpop.f32.mrf.mxu1  ;;  %v1894_v7 = vpop.f32.mrf.mxu0 }
 0x10d   :  { %v2871_v5 = vadd.f32 %v1892_v22, %v822_v12  ;;  %v1831_v48 = vadd.f32 %v1830_v0, %v1829_v23  ;;  %v1314_v20 = vmul.f32 %v978_v43, %v978_v43  ;;  %v1895_v28 = vadd.f32 %v1894_v7, %v1893_v46 }
 0x10e   :  { %v1832_v8 = vpop.f32.mrf.mxu1  ;;  %v1896_v10 = vpop.f32.mrf.mxu0  ;;  %v1301_v43 = vmul.f32 0.0013020834, %v1213_v24  ;;  %v1776_v12 = vadd.f32 %v2852_v19, %v2850_v1  ;;  %v1779_v1 = vadd.f32 %v2858_v37, %v2856_v35  ;;  %v1782_v37 = vadd.f32 %v2864_v18, %v2862_v47 }
 0x10f   :  { %v979_v54 = vmul.f32 0.0013020834, %v2871_v5  ;;  %v827_v4 = vadd.f32 %v1831_v48, %v1767_v38  ;;  %v1330_v45 = vsub.f32 %v1298_v15, %v1314_v20  ;;  %v1234_v35 = vpop.xlane.xlu0 %1233 }
 0x110   :  { %v1833_v2 = vpop.f32.mrf.mxu1  ;;  %v1897_v34 = vpop.f32.mrf.mxu0 }
 0x111   :  { %v1346_v33 = vmax.f32 %v1330_v45, 0.0  ;;  %v2874_v49 = vadd.f32 %v1895_v28, %v827_v4  ;;  %v1834_v53 = vadd.f32 %v1833_v2, %v1832_v8  ;;  %v1315_v62 = vmul.f32 %v979_v54, %v979_v54  ;;  %v1227_v4 = vpop.xlane.xlu1 %1226 }
 0x112   :  { %v1898_v29 = vadd.f32 %v1897_v34, %v1896_v10  ;;  %v1835_v51 = vpop.f32.mrf.mxu1  ;;  %v1899_v6 = vpop.f32.mrf.mxu0  ;;  %v1302_v28 = vmul.f32 0.0013020834, %v1220_v27 }
 0x113   :  { %v1362_v40 = vadd.f32 1e-12, %v1346_v33  ;;  %v980_v11 = vmul.f32 0.0013020834, %v2874_v49  ;;  %v830_v41 = vadd.f32 %v1834_v53, %v1770_v59  ;;  %v1331_v42 = vsub.f32 %v1299_v9, %v1315_v62 }
 0x114   :  { %v1836_v30 = vpop.f32.mrf.mxu1  ;;  %v1900_v21 = vpop.f32.mrf.mxu0 }
 0x115   :  { %2050 = vrsqrt.f32 %v1362_v40  ;;  %v1347_v13 = vmax.f32 %v1331_v42, 0.0  ;;  %v2877_v25 = vadd.f32 %v1898_v29, %v830_v41  ;;  %v1316_v16 = vmul.f32 %v980_v11, %v980_v11  ;;  %v1241_v47 = vpop.xlane.xlu1 %1240 }
 0x116   :  { %v1837_v44 = vadd.f32 %v1836_v30, %v1835_v51  ;;  %v1838_v14 = vpop.f32.mrf.mxu1  ;;  %v1902_v32 = vpop.f32.mrf.mxu0  ;;  %v1901_v15 = vadd.f32 %v1900_v21, %v1899_v6  ;;  %v1303_v51 = vmul.f32 0.0013020834, %v1227_v4 }
 0x117   :  { %v1363_v61 = vadd.f32 1e-12, %v1347_v13  ;;  %v981_v23 = vmul.f32 0.0013020834, %v2877_v25  ;;  %v1332_v46 = vsub.f32 %v1300_v36, %v1316_v16  ;;  %v1248_v4 = vpop.xlane.xlu0 %1247 }
 0x118   :  { %v835_v22 = vadd.f32 %v1837_v44, %v1773_v31  ;;  %v1839_v39 = vpop.f32.mrf.mxu1  ;;  %v1903_v0 = vpop.f32.mrf.mxu0 }
 0x119   :  { %2052 = vrsqrt.f32 %v1363_v61  ;;  %v1348_v7 = vmax.f32 %v1332_v46, 0.0  ;;  %v1317_v38 = vmul.f32 %v981_v23, %v981_v23  ;;  %v1840_v48 = vadd.f32 %v1839_v39, %v1838_v14 }
 0x11a   :  { %v2884_v57 = vadd.f32 %v1901_v15, %v835_v22  ;;  %v1841_v20 = vpop.f32.mrf.mxu1  ;;  %v1905_v63 = vpop.f32.mrf.mxu0  ;;  %v1904_v54 = vadd.f32 %v1903_v0, %v1902_v32  ;;  %v1304_v32 = vmul.f32 0.0013020834, %v1234_v35 }
 0x11b   :  { %v1364_v8 = vadd.f32 1e-12, %v1348_v7  ;;  %v1333_v10 = vsub.f32 %v1301_v43, %v1317_v38  ;;  %v838_v9 = vadd.f32 %v1840_v48, %v1776_v12 }
 0x11c   :  { %v982_v19 = vmul.f32 0.0013020834, %v2884_v57  ;;  %v1842_v45 = vpop.f32.mrf.mxu1  ;;  %v1906_v59 = vpop.f32.mrf.mxu0 }
 0x11d   :  { %2054 = vrsqrt.f32 %v1364_v8  ;;  %v1349_v2 = vmax.f32 %v1333_v10, 0.0  ;;  %v2889_v34 = vadd.f32 %v1904_v54, %v838_v9  ;;  %v1843_v33 = vadd.f32 %v1842_v45, %v1841_v20 }
 0x11e   :  { %v1318_v53 = vmul.f32 %v982_v19, %v982_v19  ;;  %v1844_v62 = vpop.f32.mrf.mxu1  ;;  %v1908_v29 = vpop.f32.mrf.mxu0  ;;  %v1907_v11 = vadd.f32 %v1906_v59, %v1905_v63  ;;  %v1305_v63 = vmul.f32 0.0013020834, %v1241_v47 }
 0x11f   :  { %v1365_v6 = vadd.f32 1e-12, %v1349_v2  ;;  %v983_v36 = vmul.f32 0.0013020834, %v2889_v34  ;;  %v843_v40 = vadd.f32 %v1843_v33, %v1779_v1 }
 0x120   :  { %v1334_v41 = vsub.f32 %v1302_v28, %v1318_v53  ;;  %v1845_v42 = vpop.f32.mrf.mxu1  ;;  %v1909_v24 = vpop.f32.mrf.mxu0 }
 0x121   :  { %2056 = vrsqrt.f32 %v1365_v6  ;;  %v2894_v30 = vadd.f32 %v1907_v11, %v843_v40  ;;  %v1319_v21 = vmul.f32 %v983_v36, %v983_v36  ;;  %v1846_v13 = vadd.f32 %v1845_v42, %v1844_v62 }
 0x122   :  { %v2051_v16 = vpop.eup %2050  ;;  %v1350_v31 = vmax.f32 %v1334_v41, 0.0  ;;  %v1847_v44 = vpop.f32.mrf.mxu1  ;;  %v1910_v43 = vadd.f32 %v1909_v24, %v1908_v29 }
 0x123   :  { %v1911_v14 = vpop.f32.mrf.mxu0  ;;  %v984_v61 = vmul.f32 0.0013020834, %v2894_v30  ;;  %v1335_v23 = vsub.f32 %v1303_v51, %v1319_v21  ;;  %v846_v46 = vadd.f32 %v1846_v13, %v1782_v37  ;;  %1396 = vperm.xlu0 %1952, %v2051_v16   ;;  %v1255_v24 = vpop.xlane.xlu1 %1254 }
 0x124   :  { %v1366_v18 = vadd.f32 1e-12, %v1350_v31  ;;  %v1848_v12 = vpop.f32.mrf.mxu1 }
 0x125   :  { %v1912_v22 = vpop.f32.mrf.mxu0  ;;  %v1351_v15 = vmax.f32 %v1335_v23, 0.0  ;;  %v2897_v39 = vadd.f32 %v1910_v43, %v846_v46  ;;  %v1849_v0 = vadd.f32 %v1848_v12, %v1847_v44  ;;  %v1320_v7 = vmul.f32 %v984_v61, %v984_v61 }
 0x126   :  { %v2053_v38 = vpop.eup %2052  ;;  %2058 = vrsqrt.f32 %v1366_v18  ;;  %v1913_v48 = vadd.f32 %v1912_v22, %v1911_v14  ;;  %v1850_v27 = vpop.f32.mrf.mxu1  ;;  %v1307_v46 = vmul.f32 0.0013020834, %v1255_v24 }
 0x127   :  { %v1914_v20 = vpop.f32.mrf.mxu0  ;;  %v1367_v8 = vadd.f32 1e-12, %v1351_v15  ;;  %v985_v10 = vmul.f32 0.0013020834, %v2897_v39  ;;  %v851_v9 = vadd.f32 %v1849_v0, %v2836_v3  ;;  %v1336_v54 = vsub.f32 %v1304_v32, %v1320_v7  ;;  %1401 = vperm.xlu1 %1953, %v2053_v38  }
 0x128   :  { %v1851_v1 = vpop.f32.mrf.mxu1  ;;  %v1306_v3 = vmul.f32 0.0013020834, %v1248_v4 }
 0x129   :  { %v1915_v19 = vpop.f32.mrf.mxu0  ;;  %2060 = vrsqrt.f32 %v1367_v8  ;;  %v1352_v45 = vmax.f32 %v1336_v54, 0.0  ;;  %v2901_v28 = vadd.f32 %v1913_v48, %v851_v9  ;;  %v1321_v59 = vmul.f32 %v985_v10, %v985_v10  ;;  %v1269_v8 = vpop.xlane.xlu1 %1268 }
 0x12a   :  { %v2055_v2 = vpop.eup %2054  ;;  %v1852_v33 = vadd.f32 %v1851_v1, %v1850_v27  ;;  %v1853_v53 = vpop.f32.mrf.mxu1  ;;  %v1916_v40 = vadd.f32 %v1915_v19, %v1914_v20 }
 0x12b   :  { %v1917_v62 = vpop.f32.mrf.mxu0  ;;  %v1368_v29 = vadd.f32 1e-12, %v1352_v45  ;;  %v986_v51 = vmul.f32 0.0013020834, %v2901_v28  ;;  %v1337_v6 = vsub.f32 %v1305_v63, %v1321_v59  ;;  %1406 = vperm.xlu1 %1953, %v2055_v2  }
 0x12c   :  { %v854_v36 = vadd.f32 %v1852_v33, %v2838_v56  ;;  %v1854_v11 = vpop.f32.mrf.mxu1  ;;  %v1262_v56 = vpop.xlane.xlu0 %1261 }
 0x12d   :  { %v1918_v35 = vpop.f32.mrf.mxu0  ;;  %2062 = vrsqrt.f32 %v1368_v29  ;;  %v1353_v37 = vmax.f32 %v1337_v6, 0.0  ;;  %v1855_v41 = vadd.f32 %v1854_v11, %v1853_v53  ;;  %v1322_v42 = vmul.f32 %v986_v51, %v986_v51 }
 0x12e   :  { %v2057_v21 = vpop.eup %2056  ;;  %v2905_v13 = vadd.f32 %v1916_v40, %v854_v36  ;;  %v1856_v16 = vpop.f32.mrf.mxu1  ;;  %v1919_v61 = vadd.f32 %v1918_v35, %v1917_v62  ;;  %v1308_v38 = vmul.f32 0.0013020834, %v1262_v56  ;;  %v1309_v53 = vmul.f32 0.0013020834, %v1269_v8 }
 0x12f   :  { %v1920_v31 = vpop.f32.mrf.mxu0  ;;  %v1369_v44 = vadd.f32 1e-12, %v1353_v37  ;;  %v859_v14 = vadd.f32 %v1855_v41, %v2840_v17  ;;  %v1338_v32 = vsub.f32 %v1306_v3, %v1322_v42  ;;  %1411 = vperm.xlu1 %1953, %v2057_v21  }
 0x130   :  { %v987_v23 = vmul.f32 0.0013020834, %v2905_v13  ;;  %v1857_v43 = vpop.f32.mrf.mxu1  ;;  %v1276_v41 = vpop.xlane.xlu0 %1275 }
 0x131   :  { %v1921_v47 = vpop.f32.mrf.mxu0  ;;  %2064 = vrsqrt.f32 %v1369_v44  ;;  %v1354_v18 = vmax.f32 %v1338_v32, 0.0  ;;  %v2909_v12 = vadd.f32 %v1919_v61, %v859_v14  ;;  %v1858_v22 = vadd.f32 %v1857_v43, %v1856_v16  ;;  %v1283_v32 = vpop.xlane.xlu1 %1282 }
 0x132   :  { %v1323_v15 = vmul.f32 %v987_v23, %v987_v23  ;;  %v1859_v0 = vpop.f32.mrf.mxu1  ;;  %v1922_v63 = vadd.f32 %v1921_v47, %v1920_v31  ;;  %v1310_v56 = vmul.f32 0.0013020834, %v1276_v41 }
 0x133   :  { %v1923_v7 = vpop.f32.mrf.mxu0  ;;  %v2059_v48 = vpop.eup %2058  ;;  %v1370_v17 = vadd.f32 1e-12, %v1354_v18  ;;  %v988_v27 = vmul.f32 0.0013020834, %v2909_v12  ;;  %v862_v20 = vadd.f32 %v1858_v22, %v2842_v55 }
 0x134   :  { %v1339_v10 = vsub.f32 %v1307_v46, %v1323_v15  ;;  %1416 = vperm.xlu1 %1953, %v2059_v48   ;;  %v1860_v9 = vpop.f32.mrf.mxu1 }
 0x135   :  { %v1924_v54 = vpop.f32.mrf.mxu0  ;;  %2066 = vrsqrt.f32 %v1370_v17  ;;  %v2913_v4 = vadd.f32 %v1922_v63, %v862_v20  ;;  %v1861_v1 = vadd.f32 %v1860_v9, %v1859_v0  ;;  %v1324_v19 = vmul.f32 %v988_v27, %v988_v27  ;;  %v1290_v27 = vpop.xlane.xlu0 %1289 }
 0x136   :  { %v2061_v45 = vpop.eup %2060  ;;  %v1355_v59 = vmax.f32 %v1339_v10, 0.0  ;;  %v1862_v2 = vpop.f32.mrf.mxu1  ;;  %v1925_v51 = vadd.f32 %v1924_v54, %v1923_v7  ;;  %v1311_v7 = vmul.f32 0.0013020834, %v1283_v32 }
 0x137   :  { %v1926_v33 = vpop.f32.mrf.mxu0  ;;  %v989_v62 = vmul.f32 0.0013020834, %v2913_v4  ;;  %v867_v55 = vadd.f32 %v1861_v1, %v2848_v60  ;;  %v1340_v29 = vsub.f32 %v1308_v38, %v1324_v19 }
 0x138   :  { %v1371_v6 = vadd.f32 1e-12, %v1355_v59  ;;  %1421 = vperm.xlu1 %1953, %v2061_v45   ;;  %v1863_v3 = vpop.f32.mrf.mxu1  ;;  %v1312_v45 = vmul.f32 0.0013020834, %v1290_v27 }
 0x139   :  { %v1927_v36 = vpop.f32.mrf.mxu0  ;;  %v1356_v40 = vmax.f32 %v1340_v29, 0.0  ;;  %v2917_v11 = vadd.f32 %v1925_v51, %v867_v55  ;;  %v1325_v35 = vmul.f32 %v989_v62, %v989_v62  ;;  %v1864_v37 = vadd.f32 %v1863_v3, %v1862_v2  ;;  %v1297_v62 = vpop.xlane.xlu1 %1296 }
 0x13a   :  { %v2063_v42 = vpop.eup %2062  ;;  %2068 = vrsqrt.f32 %v1371_v6  ;;  %v1928_v24 = vadd.f32 %v1927_v36, %v1926_v33  ;;  %v1865_v21 = vpop.f32.mrf.mxu1 }
 0x13b   :  { %v1929_v16 = vpop.f32.mrf.mxu0  ;;  %v1372_v31 = vadd.f32 1e-12, %v1356_v40  ;;  %v990_v60 = vmul.f32 0.0013020834, %v2917_v11  ;;  %v1341_v44 = vsub.f32 %v1309_v53, %v1325_v35  ;;  %v870_v14 = vadd.f32 %v1864_v37, %v2854_v26 }
 0x13c   :  { %1426 = vperm.xlu1 %1953, %v2063_v42   ;;  %v1866_v61 = vpop.f32.mrf.mxu1  ;;  %v1313_v35 = vmul.f32 0.0013020834, %v1297_v62 }
 0x13d   :  { %v1930_v23 = vpop.f32.mrf.mxu0  ;;  %2070 = vrsqrt.f32 %v1372_v31  ;;  %v1357_v46 = vmax.f32 %v1341_v44, 0.0  ;;  %v2921_v43 = vadd.f32 %v1928_v24, %v870_v14  ;;  %v1867_v47 = vadd.f32 %v1866_v61, %v1865_v21  ;;  %v2935_v61 = vld [vmem:[%s3035_s2] ss:$0 sm:$0xff] }
 0x13e   :  { %v2065_v18 = vpop.eup %2064  ;;  %v1326_v22 = vmul.f32 %v990_v60, %v990_v60  ;;  %v1868_v15 = vpop.f32.mrf.mxu1  ;;  %v1931_v17 = vadd.f32 %v1930_v23, %v1929_v16 }
 0x13f   :  { %v1932_v0 = vpop.f32.mrf.mxu0  ;;  %v1373_v38 = vadd.f32 1e-12, %v1357_v46  ;;  %v991_v48 = vmul.f32 0.0013020834, %v2921_v43  ;;  %v875_v26 = vadd.f32 %v1867_v47, %v2860_v50 }
 0x140   :  { %v1342_v20 = vsub.f32 %v1310_v56, %v1326_v22  ;;  %1431 = vperm.xlu1 %1953, %v2065_v18   ;;  %v1869_v63 = vpop.f32.mrf.mxu1 }
 0x141   :  { %v1933_v8 = vpop.f32.mrf.mxu0  ;;  %2072 = vrsqrt.f32 %v1373_v38  ;;  %v2925_v10 = vadd.f32 %v1931_v17, %v875_v26  ;;  %v1327_v9 = vmul.f32 %v991_v48, %v991_v48  ;;  %v1870_v54 = vadd.f32 %v1869_v63, %v1868_v15 }
 0x142   :  { %v2067_v1 = vpop.eup %2066  ;;  %v1358_v19 = vmax.f32 %v1342_v20, 0.0  ;;  %v1934_v50 = vadd.f32 %v1933_v8, %v1932_v0 }
 0x143   :  { %v992_v59 = vmul.f32 0.0013020834, %v2925_v10  ;;  %v1343_v2 = vsub.f32 %v1311_v7, %v1327_v9  ;;  %v878_v33 = vadd.f32 %v1870_v54, %v2866_v58 }
 0x144   :  { %v1374_v53 = vadd.f32 1e-12, %v1358_v19  ;;  %1436 = vperm.xlu1 %1953, %v2067_v1  }
 0x145   :  { %v1359_v55 = vmax.f32 %v1343_v2, 0.0  ;;  %v2929_v29 = vadd.f32 %v1934_v50, %v878_v33  ;;  %v1328_v51 = vmul.f32 %v992_v59, %v992_v59 }
 0x146   :  { %2074 = vrsqrt.f32 %v1374_v53 }
 0x147   :  { %v2069_v6 = vpop.eup %2068  ;;  %v1375_v3 = vadd.f32 1e-12, %v1359_v55  ;;  %v993_v36 = vmul.f32 0.0013020834, %v2929_v29  ;;  %v1344_v40 = vsub.f32 %v1312_v45, %v1328_v51 }
 0x148   :  { %1441 = vperm.xlu0 %1952, %v2069_v6  }
 0x149   :  { %2076 = vrsqrt.f32 %v1375_v3  ;;  %v1360_v37 = vmax.f32 %v1344_v40, 0.0  ;;  %v1329_v41 = vmul.f32 %v993_v36, %v993_v36 }
 0x14a   :  { %v2071_v58 = vpop.eup %2070 }
 0x14b   :  { %v1376_v42 = vadd.f32 1e-12, %v1360_v37  ;;  %v1345_v24 = vsub.f32 %v1313_v35, %v1329_v41  ;;  %1446 = vperm.xlu1 %1953, %v2071_v58  }
 0x14d   :  { %2078 = vrsqrt.f32 %v1376_v42  ;;  %v1361_v21 = vmax.f32 %v1345_v24, 0.0 }
 0x14e   :  { %v2073_v16 = vpop.eup %2072 }
 0x14f   :  { %v1377_v31 = vadd.f32 1e-12, %v1361_v21  ;;  %1451 = vperm.xlu0 %1952, %v2073_v16  }
 0x151   :  { %2080 = vrsqrt.f32 %v1377_v31 }
 0x153   :  { %v2075_v60 = vpop.eup %2074 }
 0x154   :  { %1456 = vperm.xlu1 %1953, %v2075_v60  }
 0x156   :  { %v2077_v44 = vpop.eup %2076 }
 0x157   :  { %1461 = vperm.xlu0 %1952, %v2077_v44  }
 0x15a   :  { %v2079_v14 = vpop.eup %2078 }
 0x15b   :  { %1466 = vperm.xlu1 %1953, %v2079_v14  }
 0x15e   :  { %v2081_v32 = vpop.eup %2080 }
 0x15f   :  { %1471 = vperm.xlu0 %1952, %v2081_v32  }
 0x19e   :  { %v1397_v56 = vpop.permute.xlu0 %1396 }
 0x19f   :  { %v1474_v23 = vmul.f32 %v1397_v56, %v2868_v52 }
 0x1a1   :  { %v1497_v46 = vadd.f32 %v2935_v61, %v1474_v23 }
 0x1a2   :  { %v1402_v47 = vpop.permute.xlu1 %1401 }
 0x1a3   :  { %v1727_v18 = vmul.f32 -1.442695, %v1497_v46  ;;  %v1475_v22 = vmul.f32 %v1402_v47, %v2871_v5 }
 0x1a5   :  { %2082 = vpow2.f32 %v1727_v18  ;;  %v1498_v15 = vadd.f32 %v2935_v61, %v1475_v22 }
 0x1a6   :  { %v1407_v0 = vpop.permute.xlu1 %1406 }
 0x1a7   :  { %v1728_v7 = vmul.f32 -1.442695, %v1498_v15  ;;  %v1476_v38 = vmul.f32 %v1407_v0, %v2874_v49 }
 0x1a9   :  { %2084 = vpow2.f32 %v1728_v7  ;;  %v1499_v48 = vadd.f32 %v2935_v61, %v1476_v38 }
 0x1aa   :  { %v1412_v26 = vpop.permute.xlu1 %1411 }
 0x1ab   :  { %v1729_v17 = vmul.f32 -1.442695, %v1499_v48  ;;  %v1477_v52 = vmul.f32 %v1412_v26, %v2877_v25 }
 0x1ad   :  { %2086 = vpow2.f32 %v1729_v17  ;;  %v1500_v27 = vadd.f32 %v2935_v61, %v1477_v52 }
 0x1af   :  { %v1730_v20 = vmul.f32 -1.442695, %v1500_v27  ;;  %v1417_v63 = vpop.permute.xlu1 %1416 }
 0x1b0   :  { %v1478_v5 = vmul.f32 %v1417_v63, %v2884_v57 }
 0x1b1   :  { %2088 = vpow2.f32 %v1730_v20 }
 0x1b2   :  { %v2083_v8 = vpop.eup %2082  ;;  %v1501_v9 = vadd.f32 %v2935_v61, %v1478_v5 }
 0x1b3   :  { %v1561_v54 = vadd.f32 1.0, %v2083_v8  ;;  %v1422_v49 = vpop.permute.xlu1 %1421 }
 0x1b4   :  { %v1731_v1 = vmul.f32 -1.442695, %v1501_v9  ;;  %v1479_v19 = vmul.f32 %v1422_v49, %v2889_v34 }
 0x1b5   :  { %2090 = vrcp.f32 %v1561_v54 }
 0x1b6   :  { %v2085_v45 = vpop.eup %2084  ;;  %2092 = vpow2.f32 %v1731_v1  ;;  %v1502_v25 = vadd.f32 %v2935_v61, %v1479_v19 }
 0x1b7   :  { %v1562_v59 = vadd.f32 1.0, %v2085_v45  ;;  %v1427_v2 = vpop.permute.xlu1 %1426 }
 0x1b8   :  { %v1732_v33 = vmul.f32 -1.442695, %v1502_v25  ;;  %v1480_v50 = vmul.f32 %v1427_v2, %v2894_v30 }
 0x1b9   :  { %2094 = vrcp.f32 %v1562_v59 }
 0x1ba   :  { %v2087_v57 = vpop.eup %2086  ;;  %2096 = vpow2.f32 %v1732_v33  ;;  %v1503_v53 = vadd.f32 %v2935_v61, %v1480_v50 }
 0x1bb   :  { %v1563_v62 = vadd.f32 1.0, %v2087_v57  ;;  %v1432_v55 = vpop.permute.xlu1 %1431 }
 0x1bc   :  { %v1733_v51 = vmul.f32 -1.442695, %v1503_v53  ;;  %v1481_v34 = vmul.f32 %v1432_v55, %v2897_v39 }
 0x1bd   :  { %2098 = vrcp.f32 %v1563_v62 }
 0x1be   :  { %v2089_v6 = vpop.eup %2088  ;;  %2100 = vpow2.f32 %v1733_v51  ;;  %v1504_v3 = vadd.f32 %v2935_v61, %v1481_v34 }
 0x1bf   :  { %v1564_v36 = vadd.f32 1.0, %v2089_v6  ;;  %v1437_v40 = vpop.permute.xlu1 %1436 }
 0x1c0   :  { %v1734_v35 = vmul.f32 -1.442695, %v1504_v3  ;;  %v1482_v30 = vmul.f32 %v1437_v40, %v2901_v28 }
 0x1c1   :  { %2102 = vrcp.f32 %v1564_v36 }
 0x1c2   :  { %v2091_v37 = vpop.eup %2090  ;;  %2104 = vpow2.f32 %v1734_v35  ;;  %v1505_v41 = vadd.f32 %v2935_v61, %v1482_v30 }
 0x1c3   :  { %v2093_v58 = vpop.eup %2092  ;;  %1610 = vst.msk [vmem:[%s3036_s3] sm:$0xff] %vm1609_vm0, %v2091_v37  ;;  %v1442_v39 = vpop.permute.xlu0 %1441 }
 0x1c4   :  { %v1565_v42 = vadd.f32 1.0, %v2093_v58  ;;  %v1735_v24 = vmul.f32 -1.442695, %v1505_v41  ;;  %v1483_v21 = vmul.f32 %v1442_v39, %v2905_v13 }
 0x1c6   :  { %v2095_v16 = vpop.eup %2094  ;;  %2106 = vrcp.f32 %v1565_v42  ;;  %v1506_v28 = vadd.f32 %v2935_v61, %v1483_v21  ;;  %v1447_v31 = vpop.permute.xlu1 %1446 }
 0x1c7   :  { %v2097_v60 = vpop.eup %2096  ;;  %1611 = vst.msk [vmem:[%s3036_s3 + $0x8] sm:$0xff] %vm1609_vm0, %v2095_v16  ;;  %2108 = vpow2.f32 %v1735_v24  ;;  %v1484_v44 = vmul.f32 %v1447_v31, %v2909_v12 }
 0x1c8   :  { %v1566_v14 = vadd.f32 1.0, %v2097_v60  ;;  %v1736_v32 = vmul.f32 -1.442695, %v1506_v28 }
 0x1c9   :  { %v1507_v56 = vadd.f32 %v2935_v61, %v1484_v44 }
 0x1ca   :  { %v2099_v23 = vpop.eup %2098  ;;  %2110 = vrcp.f32 %v1566_v14  ;;  %v1452_v13 = vpop.permute.xlu0 %1451 }
 0x1cb   :  { %v2101_v46 = vpop.eup %2100  ;;  %1612 = vst.msk [vmem:[%s3036_s3 + $0x10] sm:$0xff] %vm1609_vm0, %v2099_v23  ;;  %2112 = vpow2.f32 %v1736_v32  ;;  %v1737_v47 = vmul.f32 -1.442695, %v1507_v56  ;;  %v1485_v18 = vmul.f32 %v1452_v13, %v2913_v4 }
 0x1cc   :  { %v1567_v22 = vadd.f32 1.0, %v2101_v46 }
 0x1cd   :  { %2114 = vpow2.f32 %v1737_v47  ;;  %v1508_v12 = vadd.f32 %v2935_v61, %v1485_v18 }
 0x1ce   :  { %v2103_v15 = vpop.eup %2102  ;;  %2116 = vrcp.f32 %v1567_v22 }
 0x1cf   :  { %v2105_v0 = vpop.eup %2104  ;;  %1613 = vst.msk [vmem:[%s3036_s3 + $0x18] sm:$0xff] %vm1609_vm0, %v2103_v15  ;;  %v1738_v7 = vmul.f32 -1.442695, %v1508_v12  ;;  %v1457_v38 = vpop.permute.xlu1 %1456 }
 0x1d0   :  { %v1568_v48 = vadd.f32 1.0, %v2105_v0  ;;  %v1486_v26 = vmul.f32 %v1457_v38, %v2917_v11 }
 0x1d1   :  { %2118 = vpow2.f32 %v1738_v7 }
 0x1d2   :  { %2120 = vrcp.f32 %v1568_v48  ;;  %v1509_v4 = vadd.f32 %v2935_v61, %v1486_v26  ;;  %v1462_v17 = vpop.permute.xlu0 %1461 }
 0x1d3   :  { %v2107_v52 = vpop.eup %2106  ;;  %v1487_v27 = vmul.f32 %v1462_v17, %v2921_v43 }
 0x1d4   :  { %v2109_v20 = vpop.eup %2108  ;;  %1614 = vst.msk [vmem:[%s3036_s3 + $0x20] sm:$0xff] %vm1609_vm0, %v2107_v52  ;;  %v1739_v63 = vmul.f32 -1.442695, %v1509_v4 }
 0x1d5   :  { %v1569_v5 = vadd.f32 1.0, %v2109_v20  ;;  %v1510_v8 = vadd.f32 %v2935_v61, %v1487_v27 }
 0x1d6   :  { %2122 = vpow2.f32 %v1739_v63  ;;  %v1467_v11 = vpop.permute.xlu1 %1466 }
 0x1d7   :  { %v2111_v9 = vpop.eup %2110  ;;  %2124 = vrcp.f32 %v1569_v5  ;;  %v1740_v54 = vmul.f32 -1.442695, %v1510_v8  ;;  %v1488_v49 = vmul.f32 %v1467_v11, %v2925_v10 }
 0x1d8   :  { %v2113_v1 = vpop.eup %2112  ;;  %1615 = vst.msk [vmem:[%s3036_s3 + $0x28] sm:$0xff] %vm1609_vm0, %v2111_v9 }
 0x1d9   :  { %v1570_v43 = vadd.f32 1.0, %v2113_v1  ;;  %2126 = vpow2.f32 %v1740_v54  ;;  %v1511_v19 = vadd.f32 %v2935_v61, %v1488_v49 }
 0x1da   :  { %v2115_v45 = vpop.eup %2114  ;;  %v1472_v25 = vpop.permute.xlu0 %1471 }
 0x1db   :  { %v2117_v59 = vpop.eup %2116  ;;  %2128 = vrcp.f32 %v1570_v43  ;;  %v1571_v2 = vadd.f32 1.0, %v2115_v45  ;;  %v1741_v33 = vmul.f32 -1.442695, %v1511_v19  ;;  %v1489_v50 = vmul.f32 %v1472_v25, %v2929_v29 }
 0x1dc   :  { %1616 = vst.msk [vmem:[%s3036_s3 + $0x30] sm:$0xff] %vm1609_vm0, %v2117_v59 }
 0x1dd   :  { %2130 = vrcp.f32 %v1571_v2  ;;  %v1512_v10 = vadd.f32 %v2935_v61, %v1489_v50 }
 0x1de   :  { %v2119_v57 = vpop.eup %2118  ;;  %2132 = vpow2.f32 %v1741_v33 }
 0x1df   :  { %v2121_v53 = vpop.eup %2120  ;;  %v1572_v62 = vadd.f32 1.0, %v2119_v57  ;;  %v1742_v55 = vmul.f32 -1.442695, %v1512_v10 }
 0x1e0   :  { %1617 = vst.msk [vmem:[%s3036_s3 + $0x38] sm:$0xff] %vm1609_vm0, %v2121_v53 }
 0x1e1   :  { %2134 = vrcp.f32 %v1572_v62 }
 0x1e2   :  { %2136 = vpow2.f32 %v1742_v55 }
 0x1e3   :  { %v2123_v29 = vpop.eup %2122 }
 0x1e4   :  { %v2125_v51 = vpop.eup %2124  ;;  %v1573_v34 = vadd.f32 1.0, %v2123_v29 }
 0x1e5   :  { %1618 = vst.msk [vmem:[%s3036_s3 + $0x40] sm:$0xff] %vm1609_vm0, %v2125_v51 }
 0x1e6   :  { %v2127_v61 = vpop.eup %2126  ;;  %2138 = vrcp.f32 %v1573_v34 }
 0x1e7   :  { %v1574_v6 = vadd.f32 1.0, %v2127_v61 }
 0x1e8   :  { %v2129_v3 = vpop.eup %2128 }
 0x1e9   :  { %1619 = vst.msk [vmem:[%s3036_s3 + $0x48] sm:$0xff] %vm1609_vm0, %v2129_v3  ;;  %2140 = vrcp.f32 %v1574_v6 }
 0x1ea   :  { %v2131_v36 = vpop.eup %2130 }
 0x1eb   :  { %v2133_v40 = vpop.eup %2132  ;;  %1620 = vst.msk [vmem:[%s3036_s3 + $0x50] sm:$0xff] %vm1609_vm0, %v2131_v36 }
 0x1ec   :  { %v1575_v35 = vadd.f32 1.0, %v2133_v40 }
 0x1ee   :  { %v2135_v30 = vpop.eup %2134  ;;  %2142 = vrcp.f32 %v1575_v35 }
 0x1ef   :  { %v2137_v37 = vpop.eup %2136  ;;  %1621 = vst.msk [vmem:[%s3036_s3 + $0x58] sm:$0xff] %vm1609_vm0, %v2135_v30 }
 0x1f0   :  { %v1576_v41 = vadd.f32 1.0, %v2137_v37 }
 0x1f2   :  { %2144 = vrcp.f32 %v1576_v41 }
 0x1f3   :  { %v2139_v58 = vpop.eup %2138 }
 0x1f4   :  { %1622 = vst.msk [vmem:[%s3036_s3 + $0x60] sm:$0xff] %vm1609_vm0, %v2139_v58 }
 0x1f6   :  { %v2141_v39 = vpop.eup %2140 }
 0x1f7   :  { %1623 = vst.msk [vmem:[%s3036_s3 + $0x68] sm:$0xff] %vm1609_vm0, %v2141_v39 }
 0x1fb   :  { %v2143_v42 = vpop.eup %2142 }
 0x1fc   :  { %1624 = vst.msk [vmem:[%s3036_s3 + $0x70] sm:$0xff] %vm1609_vm0, %v2143_v42 }
 0x1ff   :  { %v2145_v24 = vpop.eup %2144 }
 0x200   :  { %1625 = vst.msk [vmem:[%s3036_s3 + $0x78] sm:$0xff] %vm1609_vm0, %v2145_v24 }

</bundles_post_ra>
